<compile_context>
chip_gen: v7x
topology: tpu7x:2x2x1
jax: 0.10.0
libtpu: 0.0.40
codegen_flags: <defaults>
</compile_context>

<pallas_src>
import jax
import jax.numpy as jnp
import numpy as np
from jax import lax
from jax.experimental import pallas as pl
from jax.experimental.pallas import tpu as pltpu


def _bn_eval_scale_shift(gamma, beta, mean, var, eps=1e-5):
    """Fold eval-mode BatchNorm into per-channel scale/shift column vectors (C, 1)."""
    scale = gamma / jnp.sqrt(var + eps)
    shift = beta - mean * scale
    return (scale.reshape(-1, 1).astype(jnp.float32),
            shift.reshape(-1, 1).astype(jnp.float32))


def _dw_pad_masks(k, pad, h, w):
    """Per-tap 'same' zero-padding validity masks, flattened to (k*k, h*w) f32."""
    rr = np.arange(h)[:, None]
    cc = np.arange(w)[None, :]
    rows = []
    for kh in range(k):
        for kw in range(k):
            dr, dc = kh - pad, kw - pad
            m = ((rr + dr >= 0) & (rr + dr < h) &
                 (cc + dc >= 0) & (cc + dc < w)).astype(np.float32)
            rows.append(m.reshape(-1))
    return jnp.asarray(np.stack(rows, axis=0))


# ---------------------------------------------------------------------------
# Fused MBConv kernel: one grid step == one image, layout (C, H*W) in VMEM.
# ---------------------------------------------------------------------------
def _make_mbconv_kernel(*, expand, use_residual, k, stride, h, w, pad,
                        ho, wo, cin, cmid, cout):
    hw = h * w
    hwo = ho * wo
    inv_hwo = 1.0 / float(hwo)

    def kernel(*refs):
        it = iter(refs)
        x_ref = next(it)
        if expand:
            wexp_ref, t1_ref = next(it), next(it)
        wdw_ref, t2_ref = next(it), next(it)
        mask_ref = next(it) if stride == 1 else None
        w1_ref, b1_ref, w2_ref, b2_ref = next(it), next(it), next(it), next(it)
        wproj_ref, t3_ref = next(it), next(it)
        o_ref = next(it)
        halo_ref = next(it, None)                 # VMEM scratch, stride>1 only

        x = x_ref[0].astype(jnp.float32)          # (cin, hw) — HW on lanes

        # ---- Stage 1: 1x1 expansion conv (BN scale pre-folded) + shift + SiLU --
        # MXU: (cmid, cin) @ (cin, hw)  — large HW feeds the MXU output columns.
        if expand:
            y = jnp.dot(wexp_ref[...], x, preferred_element_type=jnp.float32)
            y = y + t1_ref[...]
            y = y * jax.nn.sigmoid(y)             # SiLU
        else:
            y = x

        # ---- Stage 2: depthwise kxk conv (BN scale pre-folded) + shift + SiLU --
        wk = wdw_ref[...]                         # (cmid, k*k), already * bn_scale
        if stride == 1:
            # Lane-dense formulation: each tap is a static lane rotation of the
            # (cmid, hw) tensor (XLU) * a precomputed zero-padding mask (VALU).
            acc = jnp.zeros((cmid, hw), jnp.float32)
            for kh in range(k):
                for kw in range(k):
                    t = kh * k + kw
                    s = (kh - pad) * w + (kw - pad)       # flat source offset
                    if s % hw == 0:
                        shifted = y
                    else:
                        # shifted[p] = y[(p + s) % hw]  (wrap is masked out below)
                        shifted = pltpu.roll(y, shift=(-s) % hw, axis=1)
                    acc = acc + (shifted * mask_ref[t:t + 1, :]) * wk[:, t:t + 1]
        else:
            # Fallback: "same" padding folded in via a zero-filled VMEM halo.
            halo_ref[...] = jnp.zeros_like(halo_ref)
            halo_ref[:, pad:pad + h, pad:pad + w] = y.reshape(cmid, h, w)
            xs = halo_ref[...]                    # (cmid, h+2p, w+2p)
            acc = jnp.zeros((cmid, hwo), jnp.float32)
            for kh in range(k):                   # static unroll over taps
                for kw in range(k):
                    patch = xs[:, kh:kh + (ho - 1) * stride + 1:stride,
                               kw:kw + (wo - 1) * stride + 1:stride]
                    t = kh * k + kw
                    acc = acc + patch.reshape(cmid, hwo) * wk[:, t:t + 1]
        yd = acc + t2_ref[...]
        yd = yd * jax.nn.sigmoid(yd)              # SiLU, (cmid, hwo)

        # ---- Stage 3: squeeze-and-excitation (pool fused — no HBM re-read) ----
        pooled = jnp.sum(yd, axis=1, keepdims=True) * inv_hwo               # (cmid, 1)
        hid = jnp.sum(w1_ref[...] * pooled, axis=0, keepdims=True) + b1_ref[...]  # (1, dims)
        hid = hid * jax.nn.sigmoid(hid)                                     # SiLU
        gate = jnp.sum(w2_ref[...] * hid, axis=1, keepdims=True) + b2_ref[...]    # (cmid, 1)
        gate = jax.nn.sigmoid(gate)
        yg = yd * gate

        # ---- Stage 4: 1x1 projection conv (BN scale pre-folded) + shift (+res) -
        out = jnp.dot(wproj_ref[...], yg, preferred_element_type=jnp.float32)  # (cout, hwo)
        out = out + t3_ref[...]
        if use_residual:
            out = out + x                         # residual: already-loaded input
        o_ref[0] = out.astype(o_ref.dtype)        # lane-dense (cout, hwo) store

    return kernel


# ---------------------------------------------------------------------------
# MBConv wrapper (NCHW in / NCHW out, like the PyTorch module).
# ---------------------------------------------------------------------------
def mbconv_forward(x_nchw, p, *, kernel_size, stride, expansion_factor):
    n, cin, h, w = x_nchw.shape
    cmid = cin * expansion_factor
    cout = p["w_proj"].shape[1]
    dims = p["w1_se"].shape[0]
    expand = cin != cmid
    use_residual = (stride == 1) and (cin == cout)

    k = kernel_size
    pad = (k - 1) // 2
    ho = (h + 2 * pad - k) // stride + 1
    wo = (w + 2 * pad - k) // stride + 1
    hw, hwo = h * w, ho * wo
    hp, wp_sp = h + 2 * pad, w + 2 * pad

    # NCHW -> (N, C, H*W): a free reshape, no transpose needed in this layout.
    xf = x_nchw.reshape(n, cin, hw).astype(jnp.float32)

    # Weight plumbing (tiny tensors; layout only). BN scales are folded into the
    # conv weights so the kernel only applies the per-channel shift.
    s2, t2 = _bn_eval_scale_shift(p["bn2_g"], p["bn2_b"], p["bn2_m"], p["bn2_v"])
    s3, t3 = _bn_eval_scale_shift(p["bn3_g"], p["bn3_b"], p["bn3_m"], p["bn3_v"])
    wdw = jnp.transpose(p["w_dw"], (2, 0, 1)).reshape(cmid, k * k).astype(jnp.float32)
    wdw_s = wdw * s2                                              # (cmid, k*k)
    w1_t = jnp.transpose(p["w1_se"]).astype(jnp.float32)          # (cmid, dims)
    b1_row = p["b1_se"].reshape(1, dims).astype(jnp.float32)      # (1, dims)
    w2_t = jnp.transpose(p["w2_se"]).astype(jnp.float32)          # (cmid, dims)
    b2_col = p["b2_se"].reshape(cmid, 1).astype(jnp.float32)      # (cmid, 1)
    wproj_s = jnp.transpose(p["w_proj"]).astype(jnp.float32) * s3  # (cout, cmid)

    def _rep(shape):  # weight replicated across the batch grid (fetched once)
        return pl.BlockSpec(shape, lambda i: (0,) * len(shape))

    args = [xf]
    in_specs = [pl.BlockSpec((1, cin, hw), lambda i: (i, 0, 0))]
    if expand:
        s1, t1 = _bn_eval_scale_shift(p["bn1_g"], p["bn1_b"], p["bn1_m"], p["bn1_v"])
        wexp_s = jnp.transpose(p["w_exp"]).astype(jnp.float32) * s1   # (cmid, cin)
        args += [wexp_s, t1]
        in_specs += [_rep((cmid, cin)), _rep((cmid, 1))]
    args += [wdw_s, t2]
    in_specs += [_rep((cmid, k * k)), _rep((cmid, 1))]
    if stride == 1:
        args += [_dw_pad_masks(k, pad, h, w)]                     # (k*k, hw)
        in_specs += [_rep((k * k, hw))]
    args += [w1_t, b1_row, w2_t, b2_col, wproj_s, t3]
    in_specs += [_rep((cmid, dims)), _rep((1, dims)),
                 _rep((cmid, dims)), _rep((cmid, 1)),
                 _rep((cout, cmid)), _rep((cout, 1))]

    scratch_shapes = []
    if stride != 1:
        scratch_shapes = [pltpu.VMEM((cmid, hp, wp_sp), jnp.float32)]

    kernel = _make_mbconv_kernel(
        expand=expand, use_residual=use_residual, k=k, stride=stride,
        h=h, w=w, pad=pad, ho=ho, wo=wo, cin=cin, cmid=cmid, cout=cout)

    out = pl.pallas_call(
        kernel,
        out_shape=jax.ShapeDtypeStruct((n, cout, hwo), jnp.float32),
        grid_spec=pltpu.PrefetchScalarGridSpec(
            num_scalar_prefetch=0,
            grid=(n,),
            in_specs=in_specs,
            out_specs=pl.BlockSpec((1, cout, hwo), lambda i: (i, 0, 0)),
            scratch_shapes=scratch_shapes,
        ),
        compiler_params=pltpu.CompilerParams(
            dimension_semantics=("parallel",)),
    )(*args)

    # (N, Cout, Ho*Wo) -> NCHW, a free reshape.
    return out.reshape(n, cout, ho, wo)


# ---------------------------------------------------------------------------
# Pure-JAX reference (same eval-mode semantics) for verification.
# ---------------------------------------------------------------------------
def ref_mbconv(x_nhwc, p, *, kernel_size, stride, expansion_factor):
    def bn(x, g, b, m, v, eps=1e-5):
        return (x - m) / jnp.sqrt(v + eps) * g + b

    def silu(x):
        return x * jax.nn.sigmoid(x)

    cin = x_nhwc.shape[-1]
    cmid = cin * expansion_factor
    cout = p["w_proj"].shape[1]
    expand = cin != cmid
    use_residual = (stride == 1) and (cin == cout)

    y = x_nhwc
    if expand:
        y = jnp.einsum("nhwc,cd->nhwd", y, p["w_exp"])
        y = silu(bn(y, p["bn1_g"], p["bn1_b"], p["bn1_m"], p["bn1_v"]))
    k = kernel_size
    pad = (k - 1) // 2
    dw = p["w_dw"]
    y = lax.conv_general_dilated(
        y, dw.reshape(k, k, 1, dw.shape[-1]),
        window_strides=(stride, stride), padding=((pad, pad), (pad, pad)),
        dimension_numbers=("NHWC", "HWIO", "NHWC"),
        feature_group_count=dw.shape[-1])
    y = silu(bn(y, p["bn2_g"], p["bn2_b"], p["bn2_m"], p["bn2_v"]))
    pooled = jnp.mean(y, axis=(1, 2))                                   # (n, cmid)
    hid = silu(pooled @ p["w1_se"].T + p["b1_se"].reshape(-1))          # (n, dims)
    s = jax.nn.sigmoid(hid @ p["w2_se"] + p["b2_se"].reshape(-1))       # (n, cmid)
    y = y * s[:, None, None, :]
    y = jnp.einsum("nhwc,cd->nhwd", y, p["w_proj"])
    y = bn(y, p["bn3_g"], p["bn3_b"], p["bn3_m"], p["bn3_v"])
    if use_residual:
        y = y + x_nhwc
    return y


if __name__ == "__main__":
    # MBConv(in_channels=8, out_channels=8, kernel_size=3, stride=1, expansion_factor=4)
    N, Cin, H, W = 2, 8, 16, 16
    Cout, K, STRIDE, EXP = 8, 3, 1, 4
    Cmid = Cin * EXP                       # 32
    DIMS = int(Cin * 0.25)                 # 2

    key = jax.random.PRNGKey(0)
    ks = jax.random.split(key, 16)

    def nrm(k, shape, s=0.1):
        return jax.random.normal(k, shape, jnp.float32) * s

    params = {
        # expansion 1x1 conv: (Cin -> Cmid), stored as (Cin, Cmid)
        "w_exp": nrm(ks[0], (Cin, Cmid)),
        "bn1_g": 1.0 + nrm(ks[1], (Cmid,), 0.05),
        "bn1_b": nrm(ks[2], (Cmid,), 0.05),
        "bn1_m": nrm(ks[3], (Cmid,), 0.05),
        "bn1_v": 1.0 + jnp.abs(nrm(ks[4], (Cmid,), 0.05)),
        # depthwise KxK conv, stored as (K, K, Cmid)
        "w_dw": nrm(ks[5], (K, K, Cmid)),
        "bn2_g": 1.0 + nrm(ks[6], (Cmid,), 0.05),
        "bn2_b": nrm(ks[7], (Cmid,), 0.05),
        "bn2_m": nrm(ks[8], (Cmid,), 0.05),
        "bn2_v": 1.0 + jnp.abs(nrm(ks[9], (Cmid,), 0.05)),
        # SE 1x1 convs: (Cmid -> DIMS) and (DIMS -> Cmid), with bias
        "w1_se": nrm(ks[10], (DIMS, Cmid)),        # rows = output dims
        "b1_se": nrm(ks[11], (DIMS, 1)),
        "w2_se": nrm(ks[12], (DIMS, Cmid)),        # rows = input dims
        "b2_se": nrm(ks[13], (1, Cmid)),
        # projection 1x1 conv: (Cmid -> Cout), no bias
        "w_proj": nrm(ks[14], (Cmid, Cout)),
        "bn3_g": 1.0 + nrm(ks[15], (Cout,), 0.05),
        "bn3_b": jnp.zeros((Cout,), jnp.float32),
        "bn3_m": jnp.zeros((Cout,), jnp.float32),
        "bn3_v": jnp.ones((Cout,), jnp.float32),
    }

    x_nchw = jax.random.normal(jax.random.PRNGKey(1), (N, Cin, H, W), jnp.float32)

    out = mbconv_forward(x_nchw, params, kernel_size=K, stride=STRIDE,
                         expansion_factor=EXP)
    out = jax.block_until_ready(out)

    # Verify against the pure-JAX reference.
    ref = ref_mbconv(jnp.transpose(x_nchw, (0, 2, 3, 1)), params,
                     kernel_size=K, stride=STRIDE, expansion_factor=EXP)
    ref = jnp.transpose(ref, (0, 3, 1, 2))
    np.testing.assert_allclose(np.asarray(out), np.asarray(ref), rtol=1e-4, atol=1e-4)

    print("KERNEL_OK")
</pallas_src>

<mosaic_0001>
module attributes {stable_mosaic.version = 11 : i64} {
  func.func @kernel(%arg0: i32, %arg1: memref<1x8x256xf32, #tpu.memory_space<vmem>>, %arg2: memref<32x8xf32, #tpu.memory_space<vmem>>, %arg3: memref<32x1xf32, #tpu.memory_space<vmem>>, %arg4: memref<32x9xf32, #tpu.memory_space<vmem>>, %arg5: memref<32x1xf32, #tpu.memory_space<vmem>>, %arg6: memref<9x256xf32, #tpu.memory_space<vmem>>, %arg7: memref<32x2xf32, #tpu.memory_space<vmem>>, %arg8: memref<1x2xf32, #tpu.memory_space<vmem>>, %arg9: memref<32x2xf32, #tpu.memory_space<vmem>>, %arg10: memref<32x1xf32, #tpu.memory_space<vmem>>, %arg11: memref<8x32xf32, #tpu.memory_space<vmem>>, %arg12: memref<8x1xf32, #tpu.memory_space<vmem>>, %arg13: memref<1x8x256xf32, #tpu.memory_space<vmem>>) attributes {dimension_semantics = [#tpu.dimension_semantics<parallel>], iteration_bounds = array<i64: 2>, scalar_prefetch = 0 : i64, scratch_operands = 0 : i64, tpu.core_type = #tpu.core_type<tc>, window_params = [{transform_indices = @transform_0, window_bounds = array<i64: 1, 8, 256>}, {pipeline_mode = #tpu.pipeline_mode<synchronous>, transform_indices = @transform_1, window_bounds = array<i64: 32, 8>}, {pipeline_mode = #tpu.pipeline_mode<synchronous>, transform_indices = @transform_2, window_bounds = array<i64: 32, 1>}, {pipeline_mode = #tpu.pipeline_mode<synchronous>, transform_indices = @transform_3, window_bounds = array<i64: 32, 9>}, {pipeline_mode = #tpu.pipeline_mode<synchronous>, transform_indices = @transform_4, window_bounds = array<i64: 32, 1>}, {pipeline_mode = #tpu.pipeline_mode<synchronous>, transform_indices = @transform_5, window_bounds = array<i64: 9, 256>}, {pipeline_mode = #tpu.pipeline_mode<synchronous>, transform_indices = @transform_6, window_bounds = array<i64: 32, 2>}, {pipeline_mode = #tpu.pipeline_mode<synchronous>, transform_indices = @transform_7, window_bounds = array<i64: 1, 2>}, {pipeline_mode = #tpu.pipeline_mode<synchronous>, transform_indices = @transform_8, window_bounds = array<i64: 32, 2>}, {pipeline_mode = #tpu.pipeline_mode<synchronous>, transform_indices = @transform_9, window_bounds = array<i64: 32, 1>}, {pipeline_mode = #tpu.pipeline_mode<synchronous>, transform_indices = @transform_10, window_bounds = array<i64: 8, 32>}, {pipeline_mode = #tpu.pipeline_mode<synchronous>, transform_indices = @transform_11, window_bounds = array<i64: 8, 1>}, {transform_indices = @transform_12, window_bounds = array<i64: 1, 8, 256>}]} {
    %c0 = arith.constant 0 : index
    %c0_0 = arith.constant 0 : index
    %c0_1 = arith.constant 0 : index
    %0 = vector.load %arg1[%c0, %c0_0, %c0_1] : memref<1x8x256xf32, #tpu.memory_space<vmem>>, vector<1x8x256xf32>
    %1 = vector.shape_cast %0 : vector<1x8x256xf32> to vector<8x256xf32>
    %c0_2 = arith.constant 0 : index
    %c0_3 = arith.constant 0 : index
    %2 = vector.load %arg2[%c0_2, %c0_3] : memref<32x8xf32, #tpu.memory_space<vmem>>, vector<32x8xf32>
    %cst = arith.constant dense<0.000000e+00> : vector<32x256xf32>
    %3 = tpu.matmul %2, %1, %cst {dimension_numbers = #tpu.dot_dimension_numbers<[1], [0], [0], [1], [0, 0, 1, 1], [], []>} : vector<32x8xf32>, vector<8x256xf32>, vector<32x256xf32> -> vector<32x256xf32>
    %c0_4 = arith.constant 0 : index
    %c0_5 = arith.constant 0 : index
    %4 = vector.load %arg3[%c0_4, %c0_5] : memref<32x1xf32, #tpu.memory_space<vmem>>, vector<32x1xf32>
    %5 = vector.broadcast %4 : vector<32x1xf32> to vector<32x256xf32>
    %6 = arith.addf %3, %5 : vector<32x256xf32>
    %7 = arith.negf %6 : vector<32x256xf32>
    %8 = math.exp %7 : vector<32x256xf32>
    %cst_6 = arith.constant 1.000000e+00 : f32
    %9 = vector.broadcast %cst_6 : f32 to vector<32x256xf32>
    %10 = arith.addf %9, %8 : vector<32x256xf32>
    %11 = arith.divf %9, %10 : vector<32x256xf32>
    %12 = arith.mulf %6, %11 : vector<32x256xf32>
    %c0_7 = arith.constant 0 : index
    %c0_8 = arith.constant 0 : index
    %13 = vector.load %arg4[%c0_7, %c0_8] : memref<32x9xf32, #tpu.memory_space<vmem>>, vector<32x9xf32>
    %cst_9 = arith.constant 0.000000e+00 : f32
    %14 = vector.broadcast %cst_9 : f32 to vector<32x256xf32>
    %c17_i32 = arith.constant 17 : i32
    %15 = tpu.dynamic_rotate %12 by %c17_i32 dim 1 : vector<32x256xf32>, i32 -> vector<32x256xf32>
    %c0_10 = arith.constant 0 : index
    %c0_11 = arith.constant 0 : index
    %16 = vector.load %arg6[%c0_10, %c0_11] : memref<9x256xf32, #tpu.memory_space<vmem>>, vector<1x256xf32>
    %17 = vector.broadcast %16 : vector<1x256xf32> to vector<32x256xf32>
    %18 = arith.mulf %15, %17 : vector<32x256xf32>
    %19 = vector.extract_strided_slice %13 {offsets = [0, 0], sizes = [32, 1], strides = [1, 1]} : vector<32x9xf32> to vector<32x1xf32>
    %20 = vector.broadcast %19 : vector<32x1xf32> to vector<32x256xf32>
    %21 = arith.mulf %18, %20 : vector<32x256xf32>
    %22 = arith.addf %14, %21 : vector<32x256xf32>
    %c16_i32 = arith.constant 16 : i32
    %23 = tpu.dynamic_rotate %12 by %c16_i32 dim 1 : vector<32x256xf32>, i32 -> vector<32x256xf32>
    %c1 = arith.constant 1 : index
    %c0_12 = arith.constant 0 : index
    %24 = vector.load %arg6[%c1, %c0_12] : memref<9x256xf32, #tpu.memory_space<vmem>>, vector<1x256xf32>
    %25 = vector.broadcast %24 : vector<1x256xf32> to vector<32x256xf32>
    %26 = arith.mulf %23, %25 : vector<32x256xf32>
    %27 = vector.extract_strided_slice %13 {offsets = [0, 1], sizes = [32, 1], strides = [1, 1]} : vector<32x9xf32> to vector<32x1xf32>
    %28 = vector.broadcast %27 : vector<32x1xf32> to vector<32x256xf32>
    %29 = arith.mulf %26, %28 : vector<32x256xf32>
    %30 = arith.addf %22, %29 : vector<32x256xf32>
    %c15_i32 = arith.constant 15 : i32
    %31 = tpu.dynamic_rotate %12 by %c15_i32 dim 1 : vector<32x256xf32>, i32 -> vector<32x256xf32>
    %c2 = arith.constant 2 : index
    %c0_13 = arith.constant 0 : index
    %32 = vector.load %arg6[%c2, %c0_13] : memref<9x256xf32, #tpu.memory_space<vmem>>, vector<1x256xf32>
    %33 = vector.broadcast %32 : vector<1x256xf32> to vector<32x256xf32>
    %34 = arith.mulf %31, %33 : vector<32x256xf32>
    %35 = vector.extract_strided_slice %13 {offsets = [0, 2], sizes = [32, 1], strides = [1, 1]} : vector<32x9xf32> to vector<32x1xf32>
    %36 = vector.broadcast %35 : vector<32x1xf32> to vector<32x256xf32>
    %37 = arith.mulf %34, %36 : vector<32x256xf32>
    %38 = arith.addf %30, %37 : vector<32x256xf32>
    %c1_i32 = arith.constant 1 : i32
    %39 = tpu.dynamic_rotate %12 by %c1_i32 dim 1 : vector<32x256xf32>, i32 -> vector<32x256xf32>
    %c3 = arith.constant 3 : index
    %c0_14 = arith.constant 0 : index
    %40 = vector.load %arg6[%c3, %c0_14] : memref<9x256xf32, #tpu.memory_space<vmem>>, vector<1x256xf32>
    %41 = vector.broadcast %40 : vector<1x256xf32> to vector<32x256xf32>
    %42 = arith.mulf %39, %41 : vector<32x256xf32>
    %43 = vector.extract_strided_slice %13 {offsets = [0, 3], sizes = [32, 1], strides = [1, 1]} : vector<32x9xf32> to vector<32x1xf32>
    %44 = vector.broadcast %43 : vector<32x1xf32> to vector<32x256xf32>
    %45 = arith.mulf %42, %44 : vector<32x256xf32>
    %46 = arith.addf %38, %45 : vector<32x256xf32>
    %c4 = arith.constant 4 : index
    %c0_15 = arith.constant 0 : index
    %47 = vector.load %arg6[%c4, %c0_15] : memref<9x256xf32, #tpu.memory_space<vmem>>, vector<1x256xf32>
    %48 = vector.broadcast %47 : vector<1x256xf32> to vector<32x256xf32>
    %49 = arith.mulf %12, %48 : vector<32x256xf32>
    %50 = vector.extract_strided_slice %13 {offsets = [0, 4], sizes = [32, 1], strides = [1, 1]} : vector<32x9xf32> to vector<32x1xf32>
    %51 = vector.broadcast %50 : vector<32x1xf32> to vector<32x256xf32>
    %52 = arith.mulf %49, %51 : vector<32x256xf32>
    %53 = arith.addf %46, %52 : vector<32x256xf32>
    %c255_i32 = arith.constant 255 : i32
    %54 = tpu.dynamic_rotate %12 by %c255_i32 dim 1 : vector<32x256xf32>, i32 -> vector<32x256xf32>
    %c5 = arith.constant 5 : index
    %c0_16 = arith.constant 0 : index
    %55 = vector.load %arg6[%c5, %c0_16] : memref<9x256xf32, #tpu.memory_space<vmem>>, vector<1x256xf32>
    %56 = vector.broadcast %55 : vector<1x256xf32> to vector<32x256xf32>
    %57 = arith.mulf %54, %56 : vector<32x256xf32>
    %58 = vector.extract_strided_slice %13 {offsets = [0, 5], sizes = [32, 1], strides = [1, 1]} : vector<32x9xf32> to vector<32x1xf32>
    %59 = vector.broadcast %58 : vector<32x1xf32> to vector<32x256xf32>
    %60 = arith.mulf %57, %59 : vector<32x256xf32>
    %61 = arith.addf %53, %60 : vector<32x256xf32>
    %c241_i32 = arith.constant 241 : i32
    %62 = tpu.dynamic_rotate %12 by %c241_i32 dim 1 : vector<32x256xf32>, i32 -> vector<32x256xf32>
    %c6 = arith.constant 6 : index
    %c0_17 = arith.constant 0 : index
    %63 = vector.load %arg6[%c6, %c0_17] : memref<9x256xf32, #tpu.memory_space<vmem>>, vector<1x256xf32>
    %64 = vector.broadcast %63 : vector<1x256xf32> to vector<32x256xf32>
    %65 = arith.mulf %62, %64 : vector<32x256xf32>
    %66 = vector.extract_strided_slice %13 {offsets = [0, 6], sizes = [32, 1], strides = [1, 1]} : vector<32x9xf32> to vector<32x1xf32>
    %67 = vector.broadcast %66 : vector<32x1xf32> to vector<32x256xf32>
    %68 = arith.mulf %65, %67 : vector<32x256xf32>
    %69 = arith.addf %61, %68 : vector<32x256xf32>
    %c240_i32 = arith.constant 240 : i32
    %70 = tpu.dynamic_rotate %12 by %c240_i32 dim 1 : vector<32x256xf32>, i32 -> vector<32x256xf32>
    %c7 = arith.constant 7 : index
    %c0_18 = arith.constant 0 : index
    %71 = vector.load %arg6[%c7, %c0_18] : memref<9x256xf32, #tpu.memory_space<vmem>>, vector<1x256xf32>
    %72 = vector.broadcast %71 : vector<1x256xf32> to vector<32x256xf32>
    %73 = arith.mulf %70, %72 : vector<32x256xf32>
    %74 = vector.extract_strided_slice %13 {offsets = [0, 7], sizes = [32, 1], strides = [1, 1]} : vector<32x9xf32> to vector<32x1xf32>
    %75 = vector.broadcast %74 : vector<32x1xf32> to vector<32x256xf32>
    %76 = arith.mulf %73, %75 : vector<32x256xf32>
    %77 = arith.addf %69, %76 : vector<32x256xf32>
    %c239_i32 = arith.constant 239 : i32
    %78 = tpu.dynamic_rotate %12 by %c239_i32 dim 1 : vector<32x256xf32>, i32 -> vector<32x256xf32>
    %c8 = arith.constant 8 : index
    %c0_19 = arith.constant 0 : index
    %79 = vector.load %arg6[%c8, %c0_19] : memref<9x256xf32, #tpu.memory_space<vmem>>, vector<1x256xf32>
    %80 = vector.broadcast %79 : vector<1x256xf32> to vector<32x256xf32>
    %81 = arith.mulf %78, %80 : vector<32x256xf32>
    %82 = vector.extract_strided_slice %13 {offsets = [0, 8], sizes = [32, 1], strides = [1, 1]} : vector<32x9xf32> to vector<32x1xf32>
    %83 = vector.broadcast %82 : vector<32x1xf32> to vector<32x256xf32>
    %84 = arith.mulf %81, %83 : vector<32x256xf32>
    %85 = arith.addf %77, %84 : vector<32x256xf32>
    %c0_20 = arith.constant 0 : index
    %c0_21 = arith.constant 0 : index
    %86 = vector.load %arg5[%c0_20, %c0_21] : memref<32x1xf32, #tpu.memory_space<vmem>>, vector<32x1xf32>
    %87 = vector.broadcast %86 : vector<32x1xf32> to vector<32x256xf32>
    %88 = arith.addf %85, %87 : vector<32x256xf32>
    %89 = arith.negf %88 : vector<32x256xf32>
    %90 = math.exp %89 : vector<32x256xf32>
    %cst_22 = arith.constant 1.000000e+00 : f32
    %91 = vector.broadcast %cst_22 : f32 to vector<32x256xf32>
    %92 = arith.addf %91, %90 : vector<32x256xf32>
    %93 = arith.divf %91, %92 : vector<32x256xf32>
    %94 = arith.mulf %88, %93 : vector<32x256xf32>
    %cst_23 = arith.constant dense<0.000000e+00> : vector<32xf32>
    %95 = vector.multi_reduction <add>, %94, %cst_23 [1] : vector<32x256xf32> to vector<32xf32>
    %96 = vector.shape_cast %95 : vector<32xf32> to vector<32x1xf32>
    %cst_24 = arith.constant 3.906250e-03 : f32
    %97 = vector.broadcast %cst_24 : f32 to vector<32x1xf32>
    %98 = arith.mulf %96, %97 : vector<32x1xf32>
    %c0_25 = arith.constant 0 : index
    %c0_26 = arith.constant 0 : index
    %99 = vector.load %arg7[%c0_25, %c0_26] : memref<32x2xf32, #tpu.memory_space<vmem>>, vector<32x2xf32>
    %100 = vector.broadcast %98 : vector<32x1xf32> to vector<32x2xf32>
    %101 = arith.mulf %99, %100 : vector<32x2xf32>
    %cst_27 = arith.constant dense<0.000000e+00> : vector<2xf32>
    %102 = vector.multi_reduction <add>, %101, %cst_27 [0] : vector<32x2xf32> to vector<2xf32>
    %103 = vector.shape_cast %102 : vector<2xf32> to vector<1x2xf32>
    %c0_28 = arith.constant 0 : index
    %c0_29 = arith.constant 0 : index
    %104 = vector.load %arg8[%c0_28, %c0_29] : memref<1x2xf32, #tpu.memory_space<vmem>>, vector<1x2xf32>
    %105 = arith.addf %103, %104 : vector<1x2xf32>
    %106 = arith.negf %105 : vector<1x2xf32>
    %107 = math.exp %106 : vector<1x2xf32>
    %cst_30 = arith.constant 1.000000e+00 : f32
    %108 = vector.broadcast %cst_30 : f32 to vector<1x2xf32>
    %109 = arith.addf %108, %107 : vector<1x2xf32>
    %110 = arith.divf %108, %109 : vector<1x2xf32>
    %111 = arith.mulf %105, %110 : vector<1x2xf32>
    %c0_31 = arith.constant 0 : index
    %c0_32 = arith.constant 0 : index
    %112 = vector.load %arg9[%c0_31, %c0_32] : memref<32x2xf32, #tpu.memory_space<vmem>>, vector<32x2xf32>
    %113 = vector.broadcast %111 : vector<1x2xf32> to vector<32x2xf32>
    %114 = arith.mulf %112, %113 : vector<32x2xf32>
    %cst_33 = arith.constant dense<0.000000e+00> : vector<32xf32>
    %115 = vector.multi_reduction <add>, %114, %cst_33 [1] : vector<32x2xf32> to vector<32xf32>
    %116 = vector.shape_cast %115 : vector<32xf32> to vector<32x1xf32>
    %c0_34 = arith.constant 0 : index
    %c0_35 = arith.constant 0 : index
    %117 = vector.load %arg10[%c0_34, %c0_35] : memref<32x1xf32, #tpu.memory_space<vmem>>, vector<32x1xf32>
    %118 = arith.addf %116, %117 : vector<32x1xf32>
    %119 = arith.negf %118 : vector<32x1xf32>
    %120 = math.exp %119 : vector<32x1xf32>
    %cst_36 = arith.constant 1.000000e+00 : f32
    %121 = vector.broadcast %cst_36 : f32 to vector<32x1xf32>
    %122 = arith.addf %121, %120 : vector<32x1xf32>
    %123 = arith.divf %121, %122 : vector<32x1xf32>
    %124 = vector.broadcast %123 : vector<32x1xf32> to vector<32x256xf32>
    %125 = arith.mulf %94, %124 : vector<32x256xf32>
    %c0_37 = arith.constant 0 : index
    %c0_38 = arith.constant 0 : index
    %126 = vector.load %arg11[%c0_37, %c0_38] : memref<8x32xf32, #tpu.memory_space<vmem>>, vector<8x32xf32>
    %cst_39 = arith.constant dense<0.000000e+00> : vector<8x256xf32>
    %127 = tpu.matmul %126, %125, %cst_39 {dimension_numbers = #tpu.dot_dimension_numbers<[1], [0], [0], [1], [0, 0, 1, 1], [], []>} : vector<8x32xf32>, vector<32x256xf32>, vector<8x256xf32> -> vector<8x256xf32>
    %c0_40 = arith.constant 0 : index
    %c0_41 = arith.constant 0 : index
    %128 = vector.load %arg12[%c0_40, %c0_41] : memref<8x1xf32, #tpu.memory_space<vmem>>, vector<8x1xf32>
    %129 = vector.broadcast %128 : vector<8x1xf32> to vector<8x256xf32>
    %130 = arith.addf %127, %129 : vector<8x256xf32>
    %131 = arith.addf %130, %1 : vector<8x256xf32>
    %c0_42 = arith.constant 0 : index
    %c0_43 = arith.constant 0 : index
    %c0_44 = arith.constant 0 : index
    %132 = vector.load %arg13[%c0_42, %c0_43, %c0_44] : memref<1x8x256xf32, #tpu.memory_space<vmem>>, vector<1x8x256xf32>
    %133 = vector.shape_cast %132 : vector<1x8x256xf32> to vector<8x256xf32>
    %134 = vector.shape_cast %131 : vector<8x256xf32> to vector<1x8x256xf32>
    tpu.vector_store %arg13[%c0_42, %c0_43, %c0_44], %134 {strides = array<i32>} : memref<1x8x256xf32, #tpu.memory_space<vmem>>, vector<1x8x256xf32>,
    return
  }
  func.func @transform_0(%arg0: i32) -> (i32, i32, i32) {
    %c0_i32 = arith.constant 0 : i32
    %c0_i32_0 = arith.constant 0 : i32
    %c0_i32_1 = arith.constant 0 : i32
    return %arg0, %c0_i32, %c0_i32_0 : i32, i32, i32
  }
  func.func @transform_1(%arg0: i32) -> (i32, i32) {
    %c0_i32 = arith.constant 0 : i32
    %c0_i32_0 = arith.constant 0 : i32
    %c0_i32_1 = arith.constant 0 : i32
    return %c0_i32, %c0_i32_0 : i32, i32
  }
  func.func @transform_2(%arg0: i32) -> (i32, i32) {
    %c0_i32 = arith.constant 0 : i32
    %c0_i32_0 = arith.constant 0 : i32
    %c0_i32_1 = arith.constant 0 : i32
    return %c0_i32, %c0_i32_0 : i32, i32
  }
  func.func @transform_3(%arg0: i32) -> (i32, i32) {
    %c0_i32 = arith.constant 0 : i32
    %c0_i32_0 = arith.constant 0 : i32
    %c0_i32_1 = arith.constant 0 : i32
    return %c0_i32, %c0_i32_0 : i32, i32
  }
  func.func @transform_4(%arg0: i32) -> (i32, i32) {
    %c0_i32 = arith.constant 0 : i32
    %c0_i32_0 = arith.constant 0 : i32
    %c0_i32_1 = arith.constant 0 : i32
    return %c0_i32, %c0_i32_0 : i32, i32
  }
  func.func @transform_5(%arg0: i32) -> (i32, i32) {
    %c0_i32 = arith.constant 0 : i32
    %c0_i32_0 = arith.constant 0 : i32
    %c0_i32_1 = arith.constant 0 : i32
    return %c0_i32, %c0_i32_0 : i32, i32
  }
  func.func @transform_6(%arg0: i32) -> (i32, i32) {
    %c0_i32 = arith.constant 0 : i32
    %c0_i32_0 = arith.constant 0 : i32
    %c0_i32_1 = arith.constant 0 : i32
    return %c0_i32, %c0_i32_0 : i32, i32
  }
  func.func @transform_7(%arg0: i32) -> (i32, i32) {
    %c0_i32 = arith.constant 0 : i32
    %c0_i32_0 = arith.constant 0 : i32
    %c0_i32_1 = arith.constant 0 : i32
    return %c0_i32, %c0_i32_0 : i32, i32
  }
  func.func @transform_8(%arg0: i32) -> (i32, i32) {
    %c0_i32 = arith.constant 0 : i32
    %c0_i32_0 = arith.constant 0 : i32
    %c0_i32_1 = arith.constant 0 : i32
    return %c0_i32, %c0_i32_0 : i32, i32
  }
  func.func @transform_9(%arg0: i32) -> (i32, i32) {
    %c0_i32 = arith.constant 0 : i32
    %c0_i32_0 = arith.constant 0 : i32
    %c0_i32_1 = arith.constant 0 : i32
    return %c0_i32, %c0_i32_0 : i32, i32
  }
  func.func @transform_10(%arg0: i32) -> (i32, i32) {
    %c0_i32 = arith.constant 0 : i32
    %c0_i32_0 = arith.constant 0 : i32
    %c0_i32_1 = arith.constant 0 : i32
    return %c0_i32, %c0_i32_0 : i32, i32
  }
  func.func @transform_11(%arg0: i32) -> (i32, i32) {
    %c0_i32 = arith.constant 0 : i32
    %c0_i32_0 = arith.constant 0 : i32
    %c0_i32_1 = arith.constant 0 : i32
    return %c0_i32, %c0_i32_0 : i32, i32
  }
  func.func @transform_12(%arg0: i32) -> (i32, i32, i32) {
    %c0_i32 = arith.constant 0 : i32
    %c0_i32_0 = arith.constant 0 : i32
    %c0_i32_1 = arith.constant 0 : i32
    return %arg0, %c0_i32, %c0_i32_0 : i32, i32, i32
  }
}

</mosaic_0001>

<bundles_post_ra>
// kernel: tpu_custom_call.1
= control target key start
LH: loop header
LB: loop body
LE: loop exit
PB: predicated region body
PF: predicated region fallthrough
CT: control target
= control target key end

     0   :  { %17 = vsyncpa [#allocation3], 0  ;;  %s2998_s0 = inlined_call_operand.vmem [shape: f32[2,8,256], index: 0, kind: input, shape index: {}]   ;;  %s2999_s1 = inlined_call_operand.vmem [shape: f32[32,8], index: 1, kind: input, shape index: {}]   ;;  %s3000_s2 = inlined_call_operand.vmem [shape: f32[32,1], index: 2, kind: input, shape index: {}]   ;;  %s3001_s3 = inlined_call_operand.vmem [shape: f32[32,9], index: 3, kind: input, shape index: {}]   ;;  %s3002_s4 = inlined_call_operand.vmem [shape: f32[32,1], index: 4, kind: input, shape index: {}]   ;;  %s3003_s5 = inlined_call_operand.vmem [shape: f32[9,256], index: 5, kind: input, shape index: {}]   ;;  %s3004_s6 = inlined_call_operand.vmem [shape: f32[32,2], index: 6, kind: input, shape index: {}]   ;;  %s3005_s7 = inlined_call_operand.vmem [shape: f32[1,2], index: 7, kind: input, shape index: {}]   ;;  %s3006_s8 = inlined_call_operand.vmem [shape: f32[32,2], index: 8, kind: input, shape index: {}]   ;;  %s3007_s9 = inlined_call_operand.vmem [shape: f32[32,1], index: 9, kind: input, shape index: {}]   ;;  %s3008_s10 = inlined_call_operand.vmem [shape: f32[8,32], index: 10, kind: input, shape index: {}]   ;;  %s3009_s11 = inlined_call_operand.vmem [shape: f32[8,1], index: 11, kind: input, shape index: {}]   ;;  %s3010_s12 = inlined_call_operand.hbm [shape: f32[2,8,256], index: 12, kind: output, shape index: {}]  }
   0x1   :  { %19 = vsyncpa [#allocation3 + $0x1], 0  ;;  %s2033_s21 = smov 0   ;;  %s2035_s22 = smov 0  }
   0x2   :  { %s2037_s23 = smov 0   ;;  %s2039_s24 = smov 0  }
   0x3 LB: > { %3036 = sst [smem:[#allocation5_spill]] %s1943_s23  ;;  %s2054_s25 = sadd.s32 4294967295, %s1947_s24   ;;  %s1947_s24 = sphi %s2039_s24, %s3091_s24   ;;  %s1943_s23 = sphi %s2037_s23, %s3088_s23   ;;  %s1939_s22 = sphi %s2035_s22, %s3090_s22   ;;  %s1935_s21 = sphi %s2033_s21, %s3089_s21  }
   0x4   : > { %s1665_s26 = sadd.s32 4294967294, %s1947_s24   ;;  %s2058_s27 = sadd.s32 1, %s1947_s24  }
   0x5   : > { %s289_s28 = sadd.s32 1, %s1943_s23  ;;  %s286_s29 = ssub.s32 %s1947_s24, %s2058_s27 }
   0x6   : > { %p299_p0 = scmp.ne.s32.totalorder %s1943_s23, %s1939_s22  ;;  %p287_p1 = scmp.eq.s32.totalorder %s286_s29, 0 }
   0x7   : > { %p300_p2 = scmp.eq.s32.totalorder %s2054_s25, 1  ;;  %p305_p3 = scmp.ne.s32.totalorder %s1939_s22, %s1935_s21 }
   0x8   : > { %p306_p4 = scmp.eq.s32.totalorder %s1665_s26, 1  ;;  %p1668_p7 = scmp.ge.s32.totalorder %s1947_s24, 1 }
   0x9   : > { %s2069_s30 = scalar_select %p287_p1, %s1943_s23, %s289_s28  }
   0xa   : > { %p2071_p5 = por %p300_p2, %p299_p0  ;;  %p2075_p6 = por %p306_p4, %p305_p3 }
   0xb   : > { %3037 = sst [smem:[#allocation6_spill]] %s2069_s30  ;;  %p365_p8 = scmp.lt.s32.totalorder %s1947_s24, 3 }
   0xd   : > { %p366_p9 = pnand %p1668_p7, %p365_p8 }
   0xf   : > { %369 = sbr.rel (%p366_p9) target bundleno = 1339 (0x53b), region = 68 }
  0x16   : > { %p407_p10 = scmp.lt.s32.totalorder %s2054_s25, 1  ;;  %v1949_v0 = vmov 0.0   ;;  %v420_v1 = vld [vmem:[%s3000_s2 + $0x10] sm:$0xff]  ;;  %v1950_v2 = vmov 0   ;;  %v418_v3 = vld [vmem:[%s3000_s2] sm:$0xff]  ;;  %v421_v4 = vld [vmem:[%s3000_s2 + $0x18] sm:$0xff] }
  0x17   : > { %519 = vmatprep.mubr.f32.mxu0 %v1949_v0  ;;  %1580 = vmatprep.mubr.f32.mxu1 %v1949_v0  ;;  %v419_v5 = vld [vmem:[%s3000_s2 + $0x8] sm:$0xff]  ;;  %v414_v8 = vld [vmem:[%s2999_s1] sm:$0xff]  ;;  %vm442_vm0 = vcmask 64512   ;;  %v1951_v12 = vmov 1   ;;  %v416_v13 = vld [vmem:[%s2999_s1 + $0x10] sm:$0xff]  ;;  %v1952_v17 = vmov 2  }
  0x18   : > { %s408_s17 = scalar_select %p407_p10, %s2054_s25, 1  ;;  %1779 = vset.pattern.permute.xlu1 %v1950_v2  ;;  %1778 = vset.pattern.permute.xlu0 %v1950_v2  ;;  %v2110_v9 = vld [vmem:[%s3001_s3 + $0x8] sm:$0xff]  ;;  %v2119_v11 = vld [vmem:[%s3001_s3] sm:$0xff]  ;;  %v602_v14 = vld [vmem:[%s3001_s3 + $0x10] sm:$0xff]  ;;  %v1953_v18 = vmov 3   ;;  %v1954_v19 = vmov 4  }
  0x19   : > { %434 = vperm.xlu1 %1779, %v420_v1   ;;  %424 = vperm.xlu0 %1778, %v418_v3   ;;  %v415_v10 = vld [vmem:[%s2999_s1 + $0x8] sm:$0xff]  ;;  %v417_v15 = vld [vmem:[%s2999_s1 + $0x18] sm:$0xff]  ;;  %v1955_v20 = vmov 5   ;;  %v1956_v21 = vmov 6   ;;  %v1957_v22 = vmov 7   ;;  %v1958_v23 = vmov 8  }
  0x1a   : > { %s1711_s20 = sshll.u32 %s408_s17, 4  ;;  %v603_v16 = vld [vmem:[%s3001_s3 + $0x18] sm:$0xff]  ;;  %v1287_v24 = vld [vmem:[%s3002_s4 + $0x8] sm:$0xff]  ;;  %v1286_v25 = vld [vmem:[%s3002_s4] sm:$0xff]  ;;  %s1959_s18 = smov 15   ;;  %vm1398_vm9 = vcmask 15360  }
  0x1b   : > { %s2097_s16 = scalar_lea.vmem %s2998_s0, %s1711_s20  ;;  %s1960_s19 = smov 17   ;;  %vm1512_vm10 = vcmask 261120  }
  0x1c   : > { %v413_v6 = vld [vmem:[%s2097_s16 + $0x8] sm:$0xff]  ;;  %v412_v7 = vld [vmem:[%s2097_s16] sm:$0xff]  ;;  %s1961_s17 = smov 1   ;;  %s1962_s26 = smov 16  }
  0x1d   : > { %455 = vmatprep.subr.mxu0 %v413_v6  ;;  %439 = vperm.xlu1 %1779, %v421_v4   ;;  %s1963_s23 = smov 127   ;;  %s3012_s30 = smov 111  }
  0x1e   : > { %456 = vmatpush1.msra.mxu0 %v412_v7  ;;  %429 = vperm.xlu0 %1778, %v419_v5   ;;  %s1965_s20 = smov 113   ;;  %s1966_s28 = smov 112  }
  0x1f   : > { %1672 = vmatmul.mubr.msk.f32.vlgmr.msra.gmra.mrb[0].mxu0 %vm442_vm0, %v414_v8  ;;  %s1712_s29 = sshll.u32 %s2054_s25, 8 }
  0x20   : > { %525 = vmatprep.mubr.f32.mxu0 %v1949_v0 }
  0x21   : > { %658 = vperm.xlu1 %1779, %v2110_v9  }
  0x22   : > { %1780 = vset.pattern.permute.xlu0 %v1951_v12 }
  0x23   : > { %1673 = vmatmul.mubr.msk.f32.gmra.mrb[2].mxu0 %vm442_vm0, %v415_v10  ;;  %734 = vperm.xlu0 %1780, %v2119_v11  }
  0x24   : > { %531 = vmatprep.mubr.f32.mxu0 %v1949_v0 }
  0x25   : > { %1781 = vset.pattern.permute.xlu1 %v1951_v12 }
  0x26   : > { %738 = vperm.xlu1 %1781, %v2110_v9  }
  0x27   : > { %1674 = vmatmul.mubr.msk.f32.gmra.mrb[4].mxu0 %vm442_vm0, %v416_v13  ;;  %742 = vperm.xlu0 %1780, %v602_v14  }
  0x28   : > { %537 = vmatprep.mubr.f32.mxu0 %v1949_v0 }
  0x2a   : > { %1782 = vset.pattern.permute.xlu1 %v1950_v2 }
  0x2b   : > { %1675 = vmatmul.mubr.msk.f32.gmra.mrb[6].mxu0 %vm442_vm0, %v417_v15  ;;  %663 = vperm.xlu1 %1782, %v602_v14  }
  0x2c   : > { %746 = vperm.xlu0 %1780, %v603_v16  }
  0x2f   : > { %1783 = vset.pattern.permute.xlu1 %v1952_v17 }
  0x30   : > { %812 = vperm.xlu1 %1783, %v2119_v11   ;;  %1784 = vset.pattern.permute.xlu0 %v1952_v17 }
  0x31   : > { %816 = vperm.xlu0 %1784, %v2110_v9  }
  0x34   : > { %820 = vperm.xlu1 %1783, %v602_v14  }
  0x35   : > { %824 = vperm.xlu0 %1784, %v603_v16  }
  0x38   : > { %1785 = vset.pattern.permute.xlu1 %v1953_v18 }
  0x39   : > { %890 = vperm.xlu1 %1785, %v2119_v11   ;;  %1786 = vset.pattern.permute.xlu0 %v1953_v18 }
  0x3a   : > { %894 = vperm.xlu0 %1786, %v2110_v9  }
  0x3d   : > { %898 = vperm.xlu1 %1785, %v602_v14  }
  0x3e   : > { %902 = vperm.xlu0 %1786, %v603_v16  }
  0x41   : > { %1787 = vset.pattern.permute.xlu1 %v1954_v19 }
  0x42   : > { %943 = vperm.xlu1 %1787, %v2119_v11   ;;  %1788 = vset.pattern.permute.xlu0 %v1954_v19 }
  0x43   : > { %947 = vperm.xlu0 %1788, %v2110_v9  }
  0x46   : > { %951 = vperm.xlu1 %1787, %v602_v14  }
  0x47   : > { %955 = vperm.xlu0 %1788, %v603_v16  }
  0x4a   : > { %1789 = vset.pattern.permute.xlu1 %v1955_v20 }
  0x4b   : > { %1790 = vset.pattern.permute.xlu0 %v1955_v20  ;;  %1021 = vperm.xlu1 %1789, %v2119_v11  }
  0x4c   : > { %1025 = vperm.xlu0 %1790, %v2110_v9  }
  0x4f   : > { %1029 = vperm.xlu1 %1789, %v602_v14  }
  0x50   : > { %1033 = vperm.xlu0 %1790, %v603_v16  }
  0x53   : > { %1791 = vset.pattern.permute.xlu1 %v1956_v21 }
  0x54   : > { %1792 = vset.pattern.permute.xlu0 %v1956_v21  ;;  %1099 = vperm.xlu1 %1791, %v2119_v11  }
  0x55   : > { %1103 = vperm.xlu0 %1792, %v2110_v9  }
  0x58   : > { %1107 = vperm.xlu1 %1791, %v602_v14  }
  0x59   : > { %1111 = vperm.xlu0 %1792, %v603_v16  }
  0x5c   : > { %1793 = vset.pattern.permute.xlu1 %v1957_v22 }
  0x5d   : > { %1795 = vset.pattern.permute.xlu0 %v1958_v23  ;;  %1177 = vperm.xlu1 %1793, %v2119_v11  }
  0x5e   : > { %1259 = vperm.xlu0 %1795, %v2110_v9  }
  0x61   : > { %1185 = vperm.xlu1 %1793, %v602_v14  }
  0x62   : > { %1796 = vset.pattern.permute.xlu0 %v1957_v22 }
  0x63   : > { %1181 = vperm.xlu0 %1796, %v2110_v9  }
  0x65   : > { %1794 = vset.pattern.permute.xlu1 %v1958_v23 }
  0x66   : > { %1255 = vperm.xlu1 %1794, %v2119_v11  }
  0x67   : > { %1189 = vperm.xlu0 %1796, %v603_v16  }
  0x6a   : > { %1263 = vperm.xlu1 %1794, %v602_v14  }
  0x6b   : > { %1797 = vset.pattern.permute.xlu0 %v1950_v2 }
  0x6c   : > { %653 = vperm.xlu0 %1797, %v2119_v11  }
  0x6e   : > { %1267 = vperm.xlu1 %1794, %v603_v16  }
  0x70   : > { %668 = vperm.xlu0 %1797, %v603_v16  }
  0x72   : > { %1798 = vset.pattern.permute.xlu1 %v1950_v2 }
  0x73   : > { %1297 = vperm.xlu1 %1798, %v1287_v24  }
  0x74   : > { %1292 = vperm.xlu0 %1797, %v1286_v25  }
  0x98   : > { %v425_v26 = vpop.permute.xlu0 %424  ;;  %v435_v45 = vpop.permute.xlu1 %434 }
  0x9c   : > { %v2169_v50 = vpop.permute.xlu1 %439 }
  0x9d   : > { %v430_v34 = vpop.permute.xlu0 %429 }
  0xa0   : > { %v2177_v52 = vpop.permute.xlu1 %658 }
  0xa2   : > { %v2179_v54 = vpop.permute.xlu0 %734 }
  0xa5   : > { %v2191_v58 = vpop.permute.xlu1 %738 }
  0xa6   : > { %v2193_v59 = vpop.permute.xlu0 %742 }
  0xa7   : > { %3040 = vst [vmem:[#allocation7_spill] sm:$0xff] %v2193_v59 }
  0xaa   : > { %v2201_v62 = vpop.permute.xlu1 %663 }
  0xab   : > { %3041 = vst [vmem:[#allocation8_spill] sm:$0xff] %v2201_v62  ;;  %v2203_v63 = vpop.permute.xlu0 %746 }
  0xac   : > { %3042 = vst [vmem:[#allocation9_spill] sm:$0xff] %v2203_v63 }
  0xaf   : > { %v2213_v3 = vpop.permute.xlu1 %812 }
  0xb0   : > { %v2215_v4 = vpop.permute.xlu0 %816 }
  0xb3   : > { %v2221_v6 = vpop.permute.xlu1 %820 }
  0xb4   : > { %3043 = vst [vmem:[#allocation10_spill] sm:$0xff] %v2221_v6  ;;  %v2223_v7 = vpop.permute.xlu0 %824 }
  0xb5   : > { %3044 = vst [vmem:[#allocation11_spill] sm:$0xff] %v2223_v7 }
  0xb8   : > { %v2234_v10 = vpop.permute.xlu1 %890 }
  0xb9   : > { %v2236_v11 = vpop.permute.xlu0 %894 }
  0xbc   : > { %v2242_v15 = vpop.permute.xlu1 %898 }
  0xbd   : > { %3045 = vst [vmem:[#allocation12_spill] sm:$0xff] %v2242_v15  ;;  %v2244_v16 = vpop.permute.xlu0 %902 }
  0xbe   : > { %3046 = vst [vmem:[#allocation13_spill] sm:$0xff] %v2244_v16 }
  0xc1   : > { %v2258_v20 = vpop.permute.xlu1 %943 }
  0xc2   : > { %v2260_v21 = vpop.permute.xlu0 %947 }
  0xc5   : > { %v2268_v24 = vpop.permute.xlu1 %951 }
  0xc6   : > { %3047 = vst [vmem:[#allocation14_spill] sm:$0xff] %v2268_v24  ;;  %v2270_v25 = vpop.permute.xlu0 %955 }
  0xc7   : > { %3048 = vst [vmem:[#allocation15_spill] sm:$0xff] %v2270_v25 }
  0xf2   : > { %v521_v27 = vpop.f32.mrb[0].mxu0 }
  0xf3   : > { %v522_v28 = vadd.f32 %v521_v27, %v425_v26  ;;  %v523_v29 = vpop.f32.mrb[1].mxu0 }
  0xf4   : > { %v524_v31 = vadd.f32 %v523_v29, %v425_v26 }
  0xf5   : > { %v1676_v30 = vmul.f32 -1.442695, %v522_v28 }
  0xf6   : > { %v527_v32 = vpop.f32.mrb[2].mxu0  ;;  %v1677_v35 = vmul.f32 -1.442695, %v524_v31 }
  0xf7   : > { %1799 = vpow2.f32 %v1676_v30  ;;  %v529_v33 = vpop.f32.mrb[3].mxu0  ;;  %v528_v36 = vadd.f32 %v527_v32, %v430_v34  ;;  %v2278_v30 = vpop.permute.xlu1 %1021 }
  0xf8   : > { %1801 = vpow2.f32 %v1677_v35  ;;  %v530_v53 = vadd.f32 %v529_v33, %v430_v34 }
  0xf9   : > { %v1678_v39 = vmul.f32 -1.442695, %v528_v36 }
  0xfa   : > { %v533_v37 = vpop.f32.mrb[4].mxu0  ;;  %v1679_v56 = vmul.f32 -1.442695, %v530_v53 }
  0xfb   : > { %v2163_v38 = vpop.f32.mrb[5].mxu0  ;;  %1803 = vpow2.f32 %v1678_v39  ;;  %v534_v0 = vadd.f32 %v533_v37, %v435_v45  ;;  %v2290_v33 = vpop.permute.xlu1 %1029 }
  0xfc   : > { %v536_v8 = vadd.f32 %v2163_v38, %v435_v45  ;;  %3050 = vst [vmem:[#allocation17_spill] sm:$0xff] %v2290_v33 }
  0xfd   : > { %v1680_v1 = vmul.f32 -1.442695, %v534_v0 }
  0xfe   : > { %v2165_v40 = vpop.f32.mrb[6].mxu0  ;;  %v1681_v12 = vmul.f32 -1.442695, %v536_v8 }
  0xff   : > { %v2167_v41 = vpop.f32.mrb[7].mxu0  ;;  %v540_v17 = vadd.f32 %v2165_v40, %v2169_v50  ;;  %v2298_v37 = vpop.permute.xlu1 %1099 }
 0x100   : > { %v542_v22 = vadd.f32 %v2167_v41, %v2169_v50 }
 0x101   : > { %v1800_v42 = vpop.eup %1799  ;;  %v1682_v19 = vmul.f32 -1.442695, %v540_v17 }
 0x102   : > { %v568_v43 = vadd.f32 1.0, %v1800_v42  ;;  %v1802_v44 = vpop.eup %1801  ;;  %v1683_v27 = vmul.f32 -1.442695, %v542_v22 }
 0x103   : > { %v569_v46 = vadd.f32 1.0, %v1802_v44  ;;  %v2312_v42 = vpop.permute.xlu1 %1107 }
 0x104   : > { %1805 = vrcp.f32 %v568_v43  ;;  %3053 = vst [vmem:[#allocation20_spill] sm:$0xff] %v2312_v42 }
 0x105   : > { %v1804_v47 = vpop.eup %1803  ;;  %1807 = vrcp.f32 %v569_v46 }
 0x106   : > { %v570_v49 = vadd.f32 1.0, %v1804_v47 }
 0x107   : > { %v2322_v46 = vpop.permute.xlu1 %1177 }
 0x108   : > { %1809 = vrcp.f32 %v570_v49 }
 0x109   : > { %1811 = vpow2.f32 %v1679_v56 }
 0x10a   : > { %1813 = vpow2.f32 %v1680_v1 }
 0x10b   : > { %v2334_v49 = vpop.permute.xlu1 %1185 }
 0x10c   : > { %3057 = vst [vmem:[#allocation24_spill] sm:$0xff] %v2334_v49 }
 0x10e   : > { %v1806_v48 = vpop.eup %1805 }
 0x10f   : > { %v2171_v51 = vmul.f32 %v1806_v48, %v522_v28  ;;  %v1808_v55 = vpop.eup %1807 }
 0x110   : > { %v2189_v57 = vmul.f32 %v1808_v55, %v524_v31  ;;  %v2280_v31 = vpop.permute.xlu0 %1025  ;;  %v2344_v55 = vpop.permute.xlu1 %1255 }
 0x111   : > { %765 = vrot.lane.b32.xlu0 %v2171_v51, %s1959_s18  ;;  %604 = vrot.lane.b32.xlu1 %v2171_v51, %s1960_s19 }
 0x112   : > { %v1810_v60 = vpop.eup %1809 }
 0x113   : > { %v2199_v61 = vmul.f32 %v1810_v60, %v528_v36  ;;  %v1812_v2 = vpop.eup %1811  ;;  %v1289_v60 = vld [vmem:[%s3002_s4 + $0x18] sm:$0xff] }
 0x114   : > { %v571_v5 = vadd.f32 1.0, %v1812_v2  ;;  %v1814_v9 = vpop.eup %1813  ;;  %v2292_v34 = vpop.permute.xlu0 %1033 }
 0x115   : > { %843 = vrot.lane.b32.xlu0 %v2171_v51, %s1961_s17  ;;  %687 = vrot.lane.b32.xlu1 %v2171_v51, %s1962_s26  ;;  %v572_v13 = vadd.f32 1.0, %v1814_v9  ;;  %3051 = vst [vmem:[#allocation18_spill] sm:$0xff] %v2292_v34 }
 0x116   : > { %1815 = vrcp.f32 %v571_v5 }
 0x117   : > { %1817 = vpow2.f32 %v1681_v12 }
 0x118   : > { %1819 = vrcp.f32 %v572_v13  ;;  %v2300_v38 = vpop.permute.xlu0 %1103 }
 0x119   : > { %974 = vrot.lane.b32.xlu0 %v2171_v51, %s1963_s23  ;;  %1208 = vrot.lane.b32.xlu1 %v2171_v51, %s3012_s30  ;;  %1821 = vpow2.f32 %v1682_v19 }
 0x11a   : > { %1823 = vpow2.f32 %v1683_v27 }
 0x11c   : > { %v2314_v43 = vpop.permute.xlu0 %1111 }
 0x11d   : > { %1052 = vrot.lane.b32.xlu0 %v2171_v51, %s1965_s20  ;;  %1216 = vrot.lane.b32.xlu1 %v2189_v57, %s3012_s30  ;;  %3054 = vst [vmem:[#allocation21_spill] sm:$0xff] %v2314_v43  ;;  %v1687_v43 = vld [vmem:[%s3003_s5 + $0x4] ss:$8 sm:$0x3] }
 0x120   : > { %v1816_v14 = vpop.eup %1815  ;;  %v2324_v47 = vpop.permute.xlu0 %1259 }
 0x121   : > { %1130 = vrot.lane.b32.xlu0 %v2171_v51, %s1966_s28  ;;  %606 = vrot.lane.b32.xlu1 %v2199_v61, %s1960_s19  ;;  %v2252_v18 = vmul.f32 %v1816_v14, %v530_v53  ;;  %v1818_v23 = vpop.eup %1817  ;;  %3056 = vst [vmem:[#allocation23_spill] sm:$0xff] %v2324_v47 }
 0x122   : > { %v1820_v26 = vpop.eup %1819  ;;  %v573_v28 = vadd.f32 1.0, %v1818_v23  ;;  %v620_v23 = vlaneseq }
 0x123   : > { %v2276_v29 = vmul.f32 %v1820_v26, %v534_v0  ;;  %v1822_v32 = vpop.eup %1821  ;;  %v2357_v0 = vpop.permute.xlu1 %1263 }
 0x124   : > { %1825 = vrcp.f32 %v573_v28  ;;  %v574_v35 = vadd.f32 1.0, %v1822_v32  ;;  %v1824_v36 = vpop.eup %1823  ;;  %v2336_v50 = vpop.permute.xlu0 %1181  ;;  %3059 = vst [vmem:[#allocation26_spill] sm:$0xff] %v2357_v0  ;;  %v634_v28 = vshrl.u32 %v620_v23, 7 }
 0x125   : > { %612 = vrot.lane.b32.xlu0 %v2189_v57, %s1960_s19  ;;  %689 = vrot.lane.b32.xlu1 %v2199_v61, %s1962_s26  ;;  %3049 = vst [vmem:[#allocation16_spill] sm:$0xff] %v2276_v29  ;;  %v575_v40 = vadd.f32 1.0, %v1824_v36  ;;  %v1684_v36 = vld [vmem:[%s3003_s5 + $0x1] ss:$8 sm:$0x3] }
 0x126   : > { %1827 = vrcp.f32 %v574_v35 }
 0x127   : > { %1829 = vrcp.f32 %v575_v40  ;;  %v2363_v2 = vpop.permute.xlu1 %1267  ;;  %v2406_v40 = vsub.s32 1, %v634_v28 }
 0x128   : > { %v2346_v56 = vpop.permute.xlu0 %1189  ;;  %3060 = vst [vmem:[#allocation27_spill] sm:$0xff] %v2363_v2  ;;  %v631_v2 = vld [vmem:[%s3003_s5] ss:$8 sm:$0x3] }
 0x129   : > { %695 = vrot.lane.b32.xlu0 %v2189_v57, %s1962_s26  ;;  %767 = vrot.lane.b32.xlu1 %v2199_v61, %s1959_s18  ;;  %3058 = vst [vmem:[#allocation25_spill] sm:$0xff] %v2346_v56  ;;  %v2435_v25 = vrot.slane %v631_v2, %v2406_v40 }
 0x12c   : > { %v2359_v1 = vpop.permute.xlu0 %653 }
 0x12d   : > { %773 = vrot.lane.b32.xlu0 %v2189_v57, %s1959_s18  ;;  %845 = vrot.lane.b32.xlu1 %v2199_v61, %s1961_s17 }
 0x12e   : > { %v1826_v39 = vpop.eup %1825 }
 0x12f   : > { %v2306_v41 = vmul.f32 %v1826_v39, %v536_v8  ;;  %v2371_v8 = vpop.permute.xlu1 %1297  ;;  %v2404_v39 = vsub.s32 0, %v634_v28  ;;  %v1685_v28 = vld [vmem:[%s3003_s5 + $0x2] ss:$8 sm:$0x3] }
 0x130   : > { %v1828_v44 = vpop.eup %1827  ;;  %v2365_v5 = vpop.permute.xlu0 %668  ;;  %3062 = vst [vmem:[#allocation29_spill] sm:$0xff] %v2371_v8  ;;  %v2456_v42 = vrot.slane %v1685_v28, %v2406_v40 }
 0x131   : > { %851 = vrot.lane.b32.xlu0 %v2189_v57, %s1961_s17  ;;  %976 = vrot.lane.b32.xlu1 %v2199_v61, %s1963_s23  ;;  %3052 = vst [vmem:[#allocation19_spill] sm:$0xff] %v2306_v41  ;;  %v2320_v45 = vmul.f32 %v1828_v44, %v540_v17  ;;  %v1830_v48 = vpop.eup %1829  ;;  %3061 = vst [vmem:[#allocation28_spill] sm:$0xff] %v2365_v5  ;;  %v2408_v44 = vand.u32 127, %v620_v23  ;;  %v2420_v56 = vrot.slane %v1684_v36, %v2404_v39 }
 0x132   : > { %v2338_v53 = vmul.f32 %v1830_v48, %v542_v22  ;;  %v2423_v23 = vrot.slane %v1684_v36, %v2406_v40  ;;  %v2432_v34 = vrot.slane %v631_v2, %v2404_v39  ;;  %v2453_v49 = vrot.slane %v1685_v28, %v2404_v39 }
 0x133   : > { %3055 = vst [vmem:[#allocation22_spill] sm:$0xff] %v2320_v45  ;;  %vm622_vm1 = vcmp.lt.s32.totalorder %v2408_v44, 17  ;;  %vm703_vm2 = vcmp.lt.s32.totalorder %v2408_v44, 16  ;;  %vm781_vm3 = vcmp.lt.s32.totalorder %v2408_v44, 15  ;;  %vm859_vm4 = vcmp.lt.s32.totalorder %v2408_v44, 1 }
 0x134   : > { %v2373_v9 = vpop.permute.xlu0 %1292  ;;  %vm990_vm5 = vcmp.lt.s32.totalorder %v2408_v44, 127  ;;  %vm1224_vm6 = vcmp.lt.s32.totalorder %v2408_v44, 111  ;;  %vm1068_vm7 = vcmp.lt.s32.totalorder %v2408_v44, 113  ;;  %vm1146_vm8 = vcmp.lt.s32.totalorder %v2408_v44, 112 }
 0x135   : > { %982 = vrot.lane.b32.xlu0 %v2189_v57, %s1963_s23  ;;  %1054 = vrot.lane.b32.xlu1 %v2199_v61, %s1965_s20 }
 0x139   : > { %1060 = vrot.lane.b32.xlu0 %v2189_v57, %s1965_s20  ;;  %1132 = vrot.lane.b32.xlu1 %v2199_v61, %s1966_s28 }
 0x13d   : > { %1138 = vrot.lane.b32.xlu0 %v2189_v57, %s1966_s28  ;;  %614 = vrot.lane.b32.xlu1 %v2252_v18, %s1960_s19 }
 0x141   : > { %1210 = vrot.lane.b32.xlu0 %v2199_v61, %s3012_s30  ;;  %697 = vrot.lane.b32.xlu1 %v2252_v18, %s1962_s26 }
 0x145   : > { %1218 = vrot.lane.b32.xlu0 %v2252_v18, %s3012_s30  ;;  %775 = vrot.lane.b32.xlu1 %v2252_v18, %s1959_s18 }
 0x149   : > { %691 = vrot.lane.b32.xlu0 %v2276_v29, %s1962_s26  ;;  %853 = vrot.lane.b32.xlu1 %v2252_v18, %s1961_s17 }
 0x14d   : > { %769 = vrot.lane.b32.xlu0 %v2276_v29, %s1959_s18  ;;  %984 = vrot.lane.b32.xlu1 %v2252_v18, %s1963_s23 }
 0x151   : > { %847 = vrot.lane.b32.xlu0 %v2276_v29, %s1961_s17  ;;  %1062 = vrot.lane.b32.xlu1 %v2252_v18, %s1965_s20 }
 0x155   : > { %1056 = vrot.lane.b32.xlu0 %v2276_v29, %s1965_s20  ;;  %1140 = vrot.lane.b32.xlu1 %v2252_v18, %s1966_s28 }
 0x159   : > { %1142 = vrot.lane.b32.xlu0 %v2306_v41, %s1966_s28  ;;  %608 = vrot.lane.b32.xlu1 %v2276_v29, %s1960_s19 }
 0x15d   : > { %1220 = vrot.lane.b32.xlu0 %v2306_v41, %s3012_s30  ;;  %978 = vrot.lane.b32.xlu1 %v2276_v29, %s1963_s23 }
 0x161   : > { %693 = vrot.lane.b32.xlu0 %v2320_v45, %s1962_s26  ;;  %1134 = vrot.lane.b32.xlu1 %v2276_v29, %s1966_s28 }
 0x165   : > { %1214 = vrot.lane.b32.xlu0 %v2320_v45, %s3012_s30  ;;  %1212 = vrot.lane.b32.xlu1 %v2276_v29, %s3012_s30 }
 0x169   : > { %1066 = vrot.lane.b32.xlu0 %v2338_v53, %s1965_s20  ;;  %616 = vrot.lane.b32.xlu1 %v2306_v41, %s1960_s19 }
 0x16d   : > { %1144 = vrot.lane.b32.xlu0 %v2338_v53, %s1966_s28  ;;  %699 = vrot.lane.b32.xlu1 %v2306_v41, %s1962_s26 }
 0x171   : > { %1307 = vperm.xlu0 %1797, %v1289_v60   ;;  %777 = vrot.lane.b32.xlu1 %v2306_v41, %s1959_s18 }
 0x175   : > { %855 = vrot.lane.b32.xlu1 %v2306_v41, %s1961_s17 }
 0x179   : > { %986 = vrot.lane.b32.xlu1 %v2306_v41, %s1963_s23 }
 0x17d   : > { %1064 = vrot.lane.b32.xlu1 %v2306_v41, %s1965_s20 }
 0x181   : > { %610 = vrot.lane.b32.xlu1 %v2320_v45, %s1960_s19 }
 0x183   : > { %v766_v12 = vpop.permute.xlu0 %765  ;;  %v605_v13 = vpop.permute.xlu1 %604 }
 0x185   : > { %771 = vrot.lane.b32.xlu1 %v2320_v45, %s1959_s18 }
 0x187   : > { %v2379_v14 = vpop.permute.xlu0 %843  ;;  %v688_v17 = vpop.permute.xlu1 %687 }
 0x189   : > { %849 = vrot.lane.b32.xlu1 %v2320_v45, %s1961_s17 }
 0x18b   : > { %v2383_v19 = vpop.permute.xlu0 %974  ;;  %v2385_v22 = vpop.permute.xlu1 %1208 }
 0x18d   : > { %980 = vrot.lane.b32.xlu1 %v2320_v45, %s1963_s23 }
 0x18f   : > { %v2389_v26 = vpop.permute.xlu0 %1052  ;;  %v2391_v27 = vpop.permute.xlu1 %1216 }
 0x191   : > { %1058 = vrot.lane.b32.xlu1 %v2320_v45, %s1965_s20  ;;  %s2956_s20 = scalar_lea.hbm %s3010_s12, %s1712_s29 }
 0x193   : > { %v2395_v32 = vpop.permute.xlu0 %1130  ;;  %v2397_v35 = vpop.permute.xlu1 %606 }
 0x195   : > { %1136 = vrot.lane.b32.xlu1 %v2320_v45, %s1966_s28  ;;  %s404_s28 = sand.u32 1, %s1939_s22  }
 0x196   : > { %s1592_s25 = scalar_lea.sflag [#allocation3], %s404_s28 }
 0x197   : > { %v613_v48 = vpop.permute.xlu0 %612  ;;  %v2410_v60 = vpop.permute.xlu1 %689 }
 0x198   : > { %v623_v36 = vsel %vm622_vm1, %v605_v13, %v613_v48  ;;  %v627_v7 = vsel %vm622_vm1, %v613_v48, %v605_v13  ;;  %v1686_v13 = vld [vmem:[%s3003_s5 + $0x3] ss:$8 sm:$0x3]  ;;  %v2462_v48 = vrot.slane %v1687_v43, %v2404_v39 }
 0x199   : > { %618 = vrot.lane.b32.xlu1 %v2338_v53, %s1960_s19  ;;  %v2477_v24 = vrot.slane %v1686_v13, %v2404_v39 }
 0x19b   : > { %v696_v45 = vpop.permute.xlu0 %695  ;;  %v2437_v16 = vpop.permute.xlu1 %767 }
 0x19c   : > { %v704_v5 = vsel %vm703_vm2, %v688_v17, %v696_v45  ;;  %v708_v63 = vsel %vm703_vm2, %v696_v45, %v688_v17  ;;  %v643_v45 = vmul.f32 %v2432_v34, %v627_v7 }
 0x19d   : > { %v725_v2 = vmul.f32 %v2420_v56, %v708_v63  ;;  %v726_v0 = vmul.f32 %v2423_v23, %v704_v5  ;;  %701 = vrot.lane.b32.xlu1 %v2338_v53, %s1962_s26  ;;  %v2465_v63 = vrot.slane %v1687_v43, %v2406_v40  ;;  %v644_v5 = vmul.f32 %v2435_v25, %v623_v36 }
 0x19e   : > { %v2480_v43 = vrot.slane %v1686_v13, %v2406_v40 }
 0x19f   : > { %v774_v17 = vpop.permute.xlu0 %773  ;;  %v2469_v33 = vpop.permute.xlu1 %845  ;;  %v749_v7 = vmul.f32 %v2179_v54, %v725_v2  ;;  %v750_v36 = vmul.f32 %v2179_v54, %v726_v0  ;;  %v935_v13 = vmul.f32 %v2465_v63, %v2189_v57  ;;  %v671_v54 = vmul.f32 %v2359_v1, %v643_v45 }
 0x1a0   : > { %v782_v28 = vsel %vm781_vm3, %v766_v12, %v774_v17  ;;  %v786_v15 = vsel %vm781_vm3, %v774_v17, %v766_v12  ;;  %v1688_v12 = vld [vmem:[%s3003_s5 + $0x5] ss:$8 sm:$0x3]  ;;  %v934_v17 = vmul.f32 %v2462_v48, %v2171_v51 }
 0x1a1   : > { %v803_v41 = vmul.f32 %v2453_v49, %v786_v15  ;;  %v804_v6 = vmul.f32 %v2456_v42, %v782_v28  ;;  %779 = vrot.lane.b32.xlu1 %v2338_v53, %s1959_s18  ;;  %v672_v15 = vmul.f32 %v2359_v1, %v644_v5  ;;  %v2509_v29 = vrot.slane %v1688_v12, %v2404_v39  ;;  %v1689_v5 = vld [vmem:[%s3003_s5 + $0x6] ss:$8 sm:$0x3]  ;;  %s1669_s18 = sshll.u32 %s404_s28, 4 }
 0x1a2   : > { %v2512_v1 = vrot.slane %v1688_v12, %v2406_v40  ;;  %s406_s15 = scalar_lea.vmem [#allocation2], %s1669_s18 }
 0x1a3   : > { %v827_v0 = vmul.f32 %v2213_v3, %v803_v41  ;;  %v828_v2 = vmul.f32 %v2213_v3, %v804_v6  ;;  %v852_v28 = vpop.permute.xlu0 %851  ;;  %v2500_v62 = vpop.permute.xlu1 %976  ;;  %v757_v41 = vadd.f32 %v749_v7, %v671_v54  ;;  %v758_v45 = vadd.f32 %v750_v36, %v672_v15  ;;  %v1691_v7 = vld [vmem:[%s3003_s5 + $0x10] ss:$8 sm:$0x3]  ;;  %s1606_s30 = sshll.u32 %s406_s15, 4  ;;  %s2958_s30 = int_to_ptr.vmem [resolvable:$true] %s1606_s30 }
 0x1a4   : > { %v860_v51 = vsel %vm859_vm4, %v2379_v14, %v852_v28  ;;  %v864_v57 = vsel %vm859_vm4, %v852_v28, %v2379_v14  ;;  %v958_v14 = vmul.f32 %v2258_v20, %v934_v17  ;;  %v959_v28 = vmul.f32 %v2258_v20, %v935_v13  ;;  %s1885_s26 = scalar_lea.vmem %s2958_s30, 256 }
 0x1a5   : > { %v881_v3 = vmul.f32 %v2477_v24, %v864_v57  ;;  %v882_v6 = vmul.f32 %v2480_v43, %v860_v51  ;;  %857 = vrot.lane.b32.xlu1 %v2338_v53, %s1961_s17  ;;  %v835_v36 = vadd.f32 %v827_v0, %v757_v41  ;;  %v836_v12 = vadd.f32 %v828_v2, %v758_v45  ;;  %p1886_p11 = scmp.ne.s32.totalorder %s2958_s30, %s1885_s26 }
 0x1a6   : > { %v2539_v13 = vrot.slane %v1689_v5, %v2404_v39  ;;  %v2542_v0 = vrot.slane %v1689_v5, %v2406_v40  ;;  %v1690_v5 = vld [vmem:[%s3003_s5 + $0x7] ss:$8 sm:$0x3] }
 0x1a7   : > { %v905_v54 = vmul.f32 %v2234_v10, %v881_v3  ;;  %v906_v15 = vmul.f32 %v2234_v10, %v882_v6  ;;  %v983_v51 = vpop.permute.xlu0 %982  ;;  %v2530_v57 = vpop.permute.xlu1 %1054  ;;  %v2549_v3 = vrot.slane %v1691_v7, %v2404_v39  ;;  %v1288_v6 = vld [vmem:[%s3002_s4 + $0x10] sm:$0xff]  ;;  %p1887_p12 = pnand %p1886_p11, %p2071_p5 }
 0x1a8   : > { %v991_v20 = vsel %vm990_vm5, %v2383_v19, %v983_v51  ;;  %v995_v17 = vsel %vm990_vm5, %v983_v51, %v2383_v19  ;;  %v2552_v19 = vrot.slane %v1691_v7, %v2406_v40  ;;  %v1229_v7 = vsel %vm1224_vm6, %v2391_v27, %v2385_v22 }
 0x1a9   : > { %v913_v2 = vadd.f32 %v905_v54, %v835_v36  ;;  %v914_v41 = vadd.f32 %v906_v15, %v836_v12  ;;  %v1012_v10 = vmul.f32 %v2509_v29, %v991_v20  ;;  %v1013_v45 = vmul.f32 %v2512_v1, %v995_v17  ;;  %988 = vrot.lane.b32.xlu1 %v2338_v53, %s1963_s23  ;;  %s3063_s23 = smov 111   ;;  %p1888_p13 = pneg %p1887_p12 }
 0x1aa   : > { %v1225_v36 = vsel %vm1224_vm6, %v2385_v22, %v2391_v27  ;;  %v2582_v27 = vrot.slane %v1690_v5, %v2404_v39 }
 0x1ab   : > { %v966_v12 = vadd.f32 %v958_v14, %v913_v2  ;;  %v967_v54 = vadd.f32 %v959_v28, %v914_v41  ;;  %v1061_v15 = vpop.permute.xlu0 %1060  ;;  %v2569_v51 = vpop.permute.xlu1 %1132  ;;  %v1036_v20 = vmul.f32 %v2278_v30, %v1012_v10  ;;  %v1037_v17 = vmul.f32 %v2278_v30, %v1013_v45 }
 0x1ac   : > { %v1069_v59 = vsel %vm1068_vm7, %v2389_v26, %v1061_v15  ;;  %v1073_v8 = vsel %vm1068_vm7, %v1061_v15, %v2389_v26  ;;  %v2585_v14 = vrot.slane %v1690_v5, %v2406_v40  ;;  %v1246_v30 = vmul.f32 %v2549_v3, %v1225_v36 }
 0x1ad   : > { %v1090_v47 = vmul.f32 %v2539_v13, %v1069_v59  ;;  %v1091_v22 = vmul.f32 %v2542_v0, %v1073_v8  ;;  %1302 = vperm.xlu1 %1798, %v1288_v6   ;;  %v1247_v28 = vmul.f32 %v2552_v19, %v1229_v7  ;;  %v1044_v59 = vadd.f32 %v1036_v20, %v966_v12 }
 0x1ae   : > { %v1045_v45 = vadd.f32 %v1037_v17, %v967_v54  ;;  %v1270_v36 = vmul.f32 %v2344_v55, %v1246_v30 }
 0x1af   : > { %v1114_v2 = vmul.f32 %v2298_v37, %v1090_v47  ;;  %v1115_v41 = vmul.f32 %v2298_v37, %v1091_v22  ;;  %v1139_v26 = vpop.permute.xlu0 %1138  ;;  %v615_v10 = vpop.permute.xlu1 %614  ;;  %v1271_v7 = vmul.f32 %v2344_v55, %v1247_v28 }
 0x1b0   : > { %v1147_v8 = vsel %vm1146_vm8, %v2395_v32, %v1139_v26  ;;  %v1151_v40 = vsel %vm1146_vm8, %v1139_v26, %v2395_v32  ;;  %v624_v37 = vsel %vm622_vm1, %v2397_v35, %v615_v10  ;;  %v628_v47 = vsel %vm622_vm1, %v615_v10, %v2397_v35 }
 0x1b1   : > { %v1168_v6 = vmul.f32 %v2582_v27, %v1147_v8  ;;  %v1169_v5 = vmul.f32 %v2585_v14, %v1151_v40  ;;  %1222 = vrot.lane.b32.xlu1 %v2338_v53, %s3063_s23  ;;  %v1122_v32 = vadd.f32 %v1114_v2, %v1044_v59  ;;  %v1123_v12 = vadd.f32 %v1115_v41, %v1045_v45 }
 0x1b2   : > { %v645_v17 = vmul.f32 %v2432_v34, %v628_v47  ;;  %v646_v22 = vmul.f32 %v2435_v25, %v624_v37 }
 0x1b3   : > { %v1192_v54 = vmul.f32 %v2322_v46, %v1168_v6  ;;  %v1193_v15 = vmul.f32 %v2322_v46, %v1169_v5  ;;  %v698_v20 = vpop.permute.xlu1 %697  ;;  %v1211_v5 = vpop.permute.xlu0 %1210 }
 0x1b4   : > { %v705_v35 = vsel %vm703_vm2, %v2410_v60, %v698_v20  ;;  %v709_v30 = vsel %vm703_vm2, %v698_v20, %v2410_v60  ;;  %v673_v40 = vmul.f32 %v2177_v52, %v645_v17  ;;  %v674_v6 = vmul.f32 %v2177_v52, %v646_v22 }
 0x1b5   : > { %v1200_v55 = vadd.f32 %v1192_v54, %v1122_v32  ;;  %v1201_v28 = vadd.f32 %v1193_v15, %v1123_v12  ;;  %v727_v2 = vmul.f32 %v2420_v56, %v709_v30  ;;  %v728_v41 = vmul.f32 %v2423_v23, %v705_v35 }
 0x1b6   : > { %v936_v35 = vmul.f32 %v2462_v48, %v2199_v61 }
 0x1b7   : > { %v1278_v46 = vadd.f32 %v1270_v36, %v1200_v55  ;;  %v1279_v26 = vadd.f32 %v1271_v7, %v1201_v28  ;;  %v751_v10 = vmul.f32 %v2191_v58, %v727_v2  ;;  %v752_v59 = vmul.f32 %v2191_v58, %v728_v41  ;;  %v776_v45 = vpop.permute.xlu1 %775  ;;  %v1219_v41 = vpop.permute.xlu0 %1218 }
 0x1b8   : > { %v783_v8 = vsel %vm781_vm3, %v2437_v16, %v776_v45  ;;  %v787_v60 = vsel %vm781_vm3, %v776_v45, %v2437_v16 }
 0x1b9   : > { %v805_v37 = vmul.f32 %v2453_v49, %v787_v60  ;;  %v806_v47 = vmul.f32 %v2456_v42, %v783_v8  ;;  %v2634_v58 = vadd.f32 %v2373_v9, %v1278_v46  ;;  %v2637_v36 = vadd.f32 %v2373_v9, %v1279_v26 }
 0x1ba   : > { %v759_v7 = vadd.f32 %v751_v10, %v673_v40  ;;  %v760_v32 = vadd.f32 %v752_v59, %v674_v6  ;;  %v1226_v8 = vsel %vm1224_vm6, %v1211_v5, %v1219_v41 }
 0x1bb   : > { %v854_v12 = vpop.permute.xlu1 %853  ;;  %v829_v16 = vmul.f32 %v2215_v4, %v805_v37  ;;  %v830_v54 = vmul.f32 %v2215_v4, %v806_v47  ;;  %v1692_v17 = vmul.f32 -1.442695, %v2634_v58  ;;  %v1693_v22 = vmul.f32 -1.442695, %v2637_v36 }
 0x1bc   : > { %v861_v52 = vsel %vm859_vm4, %v2469_v33, %v854_v12  ;;  %v865_v15 = vsel %vm859_vm4, %v854_v12, %v2469_v33  ;;  %v937_v4 = vmul.f32 %v2465_v63, %v2252_v18  ;;  %v1230_v12 = vsel %vm1224_vm6, %v1219_v41, %v1211_v5 }
 0x1bd   : > { %v883_v20 = vmul.f32 %v2477_v24, %v865_v15  ;;  %v884_v9 = vmul.f32 %v2480_v43, %v861_v52  ;;  %v837_v30 = vadd.f32 %v829_v16, %v759_v7  ;;  %v838_v55 = vadd.f32 %v830_v54, %v760_v32 }
 0x1be   : > { %1831 = vpow2.f32 %v1692_v17  ;;  %v961_v45 = vmul.f32 %v2260_v21, %v937_v4  ;;  %v1248_v15 = vmul.f32 %v2549_v3, %v1226_v8  ;;  %v1249_v17 = vmul.f32 %v2552_v19, %v1230_v12  ;;  %v3065_v8 = vld [vmem:[#allocation29_spill] sm:$0xff] }
 0x1bf   : > { %v907_v28 = vmul.f32 %v2236_v11, %v883_v20  ;;  %v908_v33 = vmul.f32 %v2236_v11, %v884_v9  ;;  %v985_v2 = vpop.permute.xlu1 %984  ;;  %1833 = vpow2.f32 %v1693_v22  ;;  %v960_v11 = vmul.f32 %v2260_v21, %v936_v35 }
 0x1c0   : > { %v992_v46 = vsel %vm990_vm5, %v2500_v62, %v985_v2  ;;  %v996_v61 = vsel %vm990_vm5, %v985_v2, %v2500_v62 }
 0x1c1   : > { %v915_v26 = vadd.f32 %v907_v28, %v837_v30  ;;  %v916_v18 = vadd.f32 %v908_v33, %v838_v55  ;;  %v1014_v10 = vmul.f32 %v2509_v29, %v992_v46  ;;  %v1015_v59 = vmul.f32 %v2512_v1, %v996_v61  ;;  %v3064_v46 = vld [vmem:[#allocation23_spill] sm:$0xff] }
 0x1c2   : > { %v1273_v61 = vmul.f32 %v3064_v46, %v1249_v17 }
 0x1c3   : > { %v1063_v60 = vpop.permute.xlu1 %1062  ;;  %v968_v40 = vadd.f32 %v960_v11, %v915_v26  ;;  %v1038_v6 = vmul.f32 %v2280_v31, %v1014_v10  ;;  %v969_v47 = vadd.f32 %v961_v45, %v916_v18  ;;  %v1039_v7 = vmul.f32 %v2280_v31, %v1015_v59  ;;  %v692_v10 = vpop.permute.xlu0 %691 }
 0x1c4   : > { %v1070_v62 = vsel %vm1068_vm7, %v2530_v57, %v1063_v60  ;;  %v1074_v37 = vsel %vm1068_vm7, %v1063_v60, %v2530_v57 }
 0x1c5   : > { %v1092_v21 = vmul.f32 %v2539_v13, %v1070_v62  ;;  %v1093_v32 = vmul.f32 %v2542_v0, %v1074_v37  ;;  %v1046_v20 = vadd.f32 %v1038_v6, %v968_v40  ;;  %v1047_v5 = vadd.f32 %v1039_v7, %v969_v47 }
 0x1c7   : > { %v1116_v16 = vmul.f32 %v2300_v38, %v1092_v21  ;;  %v1117_v54 = vmul.f32 %v2300_v38, %v1093_v32  ;;  %v1141_v52 = vpop.permute.xlu1 %1140  ;;  %v770_v37 = vpop.permute.xlu0 %769 }
 0x1c8   : > { %v1148_v57 = vsel %vm1146_vm8, %v2569_v51, %v1141_v52  ;;  %v1152_v31 = vsel %vm1146_vm8, %v1141_v52, %v2569_v51  ;;  %v1832_v9 = vpop.eup %1831  ;;  %v1272_v51 = vmul.f32 %v3064_v46, %v1248_v15 }
 0x1c9   : > { %v1170_v22 = vmul.f32 %v2582_v27, %v1148_v57  ;;  %v1171_v38 = vmul.f32 %v2585_v14, %v1152_v31  ;;  %v1834_v35 = vpop.eup %1833  ;;  %v1124_v4 = vadd.f32 %v1116_v16, %v1046_v20  ;;  %v1342_v30 = vadd.f32 1.0, %v1832_v9 }
 0x1ca   : > { %v1125_v55 = vadd.f32 %v1117_v54, %v1047_v5  ;;  %v1343_v41 = vadd.f32 1.0, %v1834_v35 }
 0x1cb   : > { %v1194_v28 = vmul.f32 %v2336_v50, %v1170_v22  ;;  %v1195_v33 = vmul.f32 %v2336_v50, %v1171_v38  ;;  %v609_v2 = vpop.permute.xlu1 %608  ;;  %1835 = vrcp.f32 %v1342_v30  ;;  %v848_v54 = vpop.permute.xlu0 %847 }
 0x1cc   : > { %1837 = vrcp.f32 %v1343_v41 }
 0x1cd   : > { %v1202_v26 = vadd.f32 %v1194_v28, %v1124_v4  ;;  %v1203_v18 = vadd.f32 %v1195_v33, %v1125_v55 }
 0x1cf   : > { %v2697_v59 = vpop.permute.xlu1 %978  ;;  %v1280_v11 = vadd.f32 %v1272_v51, %v1202_v26  ;;  %v1281_v45 = vadd.f32 %v1273_v61, %v1203_v18  ;;  %v1057_v5 = vpop.permute.xlu0 %1056  ;;  %v3067_v26 = vld [vmem:[#allocation16_spill] sm:$0xff] }
 0x1d0   : > { %v938_v18 = vmul.f32 %v2462_v48, %v3067_v26 }
 0x1d1   : > { %v2700_v60 = vadd.f32 %v3065_v8, %v1280_v11  ;;  %v2703_v50 = vadd.f32 %v3065_v8, %v1281_v45  ;;  %v3068_v11 = vld [vmem:[#allocation8_spill] sm:$0xff] }
 0x1d3   : > { %v1135_v40 = vpop.permute.xlu1 %1134  ;;  %v1694_v6 = vmul.f32 -1.442695, %v2700_v60  ;;  %v1695_v62 = vmul.f32 -1.442695, %v2703_v50 }
 0x1d5   : > { %1839 = vpow2.f32 %v1694_v6  ;;  %v1836_v47 = vpop.eup %1835  ;;  %v3069_v6 = vld [vmem:[#allocation10_spill] sm:$0xff] }
 0x1d6   : > { %1841 = vpow2.f32 %v1695_v62  ;;  %v1838_v7 = vpop.eup %1837  ;;  %v2710_v32 = vmul.f32 %v1836_v47, %v2634_v58 }
 0x1d7   : > { %v2707_v21 = vpop.permute.xlu1 %1212  ;;  %v2713_v12 = vmul.f32 %v1838_v7, %v2637_v36  ;;  %v3070_v7 = vld [vmem:[#allocation19_spill] sm:$0xff] }
 0x1d9   : > { %v1374_v16 = vadd.f32 %v2713_v12, %v2710_v32 }
 0x1db   : > { %v617_v52 = vpop.permute.xlu1 %616  ;;  %1375 = vadd.xlane.f32.xlu1 %v1374_v16  ;;  %v939_v16 = vmul.f32 %v2465_v63, %v3070_v7 }
 0x1dc   : > { %v625_v20 = vsel %vm622_vm1, %v609_v2, %v617_v52  ;;  %v629_v9 = vsel %vm622_vm1, %v617_v52, %v609_v2  ;;  %v3066_v2 = vld [vmem:[#allocation7_spill] sm:$0xff] }
 0x1dd   : > { %v647_v4 = vmul.f32 %v2432_v34, %v629_v9  ;;  %v648_v30 = vmul.f32 %v2435_v25, %v625_v20 }
 0x1df   : > { %v1840_v15 = vpop.eup %1839  ;;  %v700_v57 = vpop.permute.xlu1 %699  ;;  %v675_v45 = vmul.f32 %v3068_v11, %v647_v4  ;;  %v676_v8 = vmul.f32 %v3068_v11, %v648_v30  ;;  %v3072_v4 = vld [vmem:[#allocation12_spill] sm:$0xff] }
 0x1e0   : > { %v1842_v31 = vpop.eup %1841  ;;  %v706_v58 = vsel %vm703_vm2, %v692_v10, %v700_v57  ;;  %v710_v36 = vsel %vm703_vm2, %v700_v57, %v692_v10  ;;  %v1344_v17 = vadd.f32 1.0, %v1840_v15  ;;  %v1143_v10 = vpop.permute.xlu0 %1142 }
 0x1e1   : > { %v729_v22 = vmul.f32 %v2420_v56, %v710_v36  ;;  %v730_v38 = vmul.f32 %v2423_v23, %v706_v58  ;;  %v1345_v35 = vadd.f32 1.0, %v1842_v31  ;;  %v1149_v52 = vsel %vm1146_vm8, %v1135_v40, %v1143_v10  ;;  %v3071_v36 = vld [vmem:[#allocation14_spill] sm:$0xff] }
 0x1e2   : > { %1843 = vrcp.f32 %v1344_v17  ;;  %v962_v17 = vmul.f32 %v3071_v36, %v938_v18 }
 0x1e3   : > { %v778_v55 = vpop.permute.xlu1 %777  ;;  %1845 = vrcp.f32 %v1345_v35  ;;  %v753_v41 = vmul.f32 %v3066_v2, %v729_v22  ;;  %v754_v46 = vmul.f32 %v3066_v2, %v730_v38  ;;  %v1153_v22 = vsel %vm1146_vm8, %v1143_v10, %v1135_v40 }
 0x1e4   : > { %v784_v28 = vsel %vm781_vm3, %v770_v37, %v778_v55  ;;  %v788_v33 = vsel %vm781_vm3, %v778_v55, %v770_v37  ;;  %v1172_v2 = vmul.f32 %v2582_v27, %v1149_v52  ;;  %v1173_v11 = vmul.f32 %v2585_v14, %v1153_v22 }
 0x1e5   : > { %v807_v51 = vmul.f32 %v2453_v49, %v788_v33  ;;  %v808_v61 = vmul.f32 %v2456_v42, %v784_v28  ;;  %v761_v57 = vadd.f32 %v753_v41, %v675_v45  ;;  %v762_v31 = vadd.f32 %v754_v46, %v676_v8 }
 0x1e7   : > { %v831_v62 = vmul.f32 %v3069_v6, %v807_v51  ;;  %v832_v37 = vmul.f32 %v3069_v6, %v808_v61  ;;  %v856_v47 = vpop.permute.xlu1 %855  ;;  %v1221_v51 = vpop.permute.xlu0 %1220 }
 0x1e8   : > { %v862_v15 = vsel %vm859_vm4, %v848_v54, %v856_v47  ;;  %v866_v20 = vsel %vm859_vm4, %v856_v47, %v848_v54  ;;  %v963_v54 = vmul.f32 %v3071_v36, %v939_v16  ;;  %v1227_v45 = vsel %vm1224_vm6, %v2707_v21, %v1221_v51  ;;  %v3074_v36 = vld [vmem:[#allocation20_spill] sm:$0xff] }
 0x1e9   : > { %v885_v9 = vmul.f32 %v2477_v24, %v866_v20  ;;  %v886_v58 = vmul.f32 %v2480_v43, %v862_v15  ;;  %v839_v38 = vadd.f32 %v831_v62, %v761_v57  ;;  %v840_v35 = vadd.f32 %v832_v37, %v762_v31  ;;  %v3073_v37 = vld [vmem:[#allocation17_spill] sm:$0xff] }
 0x1ea   : > { %v1231_v52 = vsel %vm1224_vm6, %v1221_v51, %v2707_v21 }
 0x1eb   : > { %v909_v30 = vmul.f32 %v3072_v4, %v885_v9  ;;  %v910_v55 = vmul.f32 %v3072_v4, %v886_v58  ;;  %v987_v28 = vpop.permute.xlu1 %986  ;;  %v1250_v58 = vmul.f32 %v2549_v3, %v1227_v45  ;;  %v1251_v21 = vmul.f32 %v2552_v19, %v1231_v52 }
 0x1ec   : > { %v1844_v33 = vpop.eup %1843  ;;  %v993_v41 = vsel %vm990_vm5, %v2697_v59, %v987_v28  ;;  %v997_v40 = vsel %vm990_vm5, %v987_v28, %v2697_v59  ;;  %v3076_v28 = vld [vmem:[#allocation26_spill] sm:$0xff] }
 0x1ed   : > { %v1846_v46 = vpop.eup %1845  ;;  %v917_v61 = vadd.f32 %v909_v30, %v839_v38  ;;  %v918_v26 = vadd.f32 %v910_v55, %v840_v35  ;;  %v1016_v18 = vmul.f32 %v2509_v29, %v993_v41  ;;  %v1017_v10 = vmul.f32 %v2512_v1, %v997_v40 }
 0x1ee   : > { %v2773_v8 = vmul.f32 %v1844_v33, %v2700_v60  ;;  %v2776_v6 = vmul.f32 %v1846_v46, %v2703_v50  ;;  %v1274_v33 = vmul.f32 %v3076_v28, %v1250_v58 }
 0x1ef   : > { %v970_v59 = vadd.f32 %v962_v17, %v917_v61  ;;  %v971_v62 = vadd.f32 %v963_v54, %v918_v26  ;;  %v1040_v47 = vmul.f32 %v3073_v37, %v1016_v18  ;;  %v1041_v7 = vmul.f32 %v3073_v37, %v1017_v10  ;;  %v1065_v16 = vpop.permute.xlu1 %1064 }
 0x1f0   : > { %v1071_v15 = vsel %vm1068_vm7, %v1057_v5, %v1065_v16  ;;  %v1075_v60 = vsel %vm1068_vm7, %v1065_v16, %v1057_v5  ;;  %v1377_v50 = vadd.f32 %v2776_v6, %v2773_v8  ;;  %v3075_v5 = vld [vmem:[#allocation24_spill] sm:$0xff]  ;;  %v1275_v54 = vmul.f32 %v3076_v28, %v1251_v21 }
 0x1f1   : > { %v1048_v20 = vadd.f32 %v1040_v47, %v970_v59  ;;  %v1049_v57 = vadd.f32 %v1041_v7, %v971_v62  ;;  %v1094_v31 = vmul.f32 %v2539_v13, %v1071_v15  ;;  %v1095_v9 = vmul.f32 %v2542_v0, %v1075_v60  ;;  %v694_v62 = vpop.permute.xlu0 %693 }
 0x1f2   : > { %1378 = vadd.xlane.f32.xlu0 %v1377_v50  ;;  %v1196_v35 = vmul.f32 %v3075_v5, %v1172_v2  ;;  %v1197_v4 = vmul.f32 %v3075_v5, %v1173_v11 }
 0x1f3   : > { %v1118_v17 = vmul.f32 %v3074_v36, %v1094_v31  ;;  %v1119_v22 = vmul.f32 %v3074_v36, %v1095_v9  ;;  %v611_v38 = vpop.permute.xlu1 %610 }
 0x1f5   : > { %v1126_v30 = vadd.f32 %v1118_v17, %v1048_v20  ;;  %v1127_v55 = vadd.f32 %v1119_v22, %v1049_v57  ;;  %v3077_v17 = vld [vmem:[#allocation9_spill] sm:$0xff]  ;;  %v1215_v5 = vpop.permute.xlu0 %1214 }
 0x1f7   : > { %v772_v41 = vpop.permute.xlu1 %771  ;;  %v1204_v40 = vadd.f32 %v1196_v35, %v1126_v30  ;;  %v1205_v46 = vadd.f32 %v1197_v4, %v1127_v55  ;;  %v3078_v35 = vld [vmem:[#allocation28_spill] sm:$0xff] }
 0x1f9   : > { %v2799_v51 = vadd.f32 %v1274_v33, %v1204_v40  ;;  %v2801_v61 = vadd.f32 %v1275_v54, %v1205_v46  ;;  %v3080_v33 = vld [vmem:[#allocation13_spill] sm:$0xff]  ;;  %v3081_v40 = vld [vmem:[#allocation22_spill] sm:$0xff] }
 0x1fa   : > { %v940_v46 = vmul.f32 %v2462_v48, %v3081_v40 }
 0x1fb   : > { %v850_v26 = vpop.permute.xlu1 %849 }
 0x1ff   : > { %v981_v18 = vpop.permute.xlu1 %980 }
 0x203   : > { %v1059_v10 = vpop.permute.xlu1 %1058 }
 0x207   : > { %v1137_v45 = vpop.permute.xlu1 %1136 }
 0x20b   : > { %v619_v2 = vpop.permute.xlu1 %618 }
 0x20c   : > { %v626_v7 = vsel %vm622_vm1, %v611_v38, %v619_v2  ;;  %v630_v16 = vsel %vm622_vm1, %v619_v2, %v611_v38 }
 0x20d   : > { %v649_v9 = vmul.f32 %v2432_v34, %v630_v16  ;;  %v650_v58 = vmul.f32 %v2435_v25, %v626_v7  ;;  %v3079_v34 = vld [vmem:[#allocation11_spill] sm:$0xff] }
 0x20e   : > { %v3082_v16 = vld [vmem:[#allocation15_spill] sm:$0xff] }
 0x20f   : > { %v702_v59 = vpop.permute.xlu1 %701  ;;  %v677_v4 = vmul.f32 %v3078_v35, %v649_v9  ;;  %v678_v30 = vmul.f32 %v3078_v35, %v650_v58 }
 0x210   : > { %v707_v37 = vsel %vm703_vm2, %v694_v62, %v702_v59  ;;  %v711_v47 = vsel %vm703_vm2, %v702_v59, %v694_v62 }
 0x211   : > { %v731_v50 = vmul.f32 %v2420_v56, %v711_v47  ;;  %v732_v20 = vmul.f32 %v2423_v23, %v707_v37 }
 0x213   : > { %v780_v11 = vpop.permute.xlu1 %779  ;;  %v755_v22 = vmul.f32 %v3077_v17, %v731_v50  ;;  %v756_v56 = vmul.f32 %v3077_v17, %v732_v20 }
 0x214   : > { %v785_v52 = vsel %vm781_vm3, %v772_v41, %v780_v11  ;;  %v789_v15 = vsel %vm781_vm3, %v780_v11, %v772_v41  ;;  %v1067_v11 = vpop.permute.xlu0 %1066 }
 0x215   : > { %v809_v21 = vmul.f32 %v2453_v49, %v789_v15  ;;  %v810_v36 = vmul.f32 %v2456_v42, %v785_v52  ;;  %v763_v28 = vadd.f32 %v755_v22, %v677_v4  ;;  %v764_v42 = vadd.f32 %v756_v56, %v678_v30  ;;  %v3084_v56 = vld [vmem:[#allocation21_spill] sm:$0xff] }
 0x216   : > { %v964_v52 = vmul.f32 %v3082_v16, %v940_v46  ;;  %v1076_v48 = vsel %vm1068_vm7, %v1067_v11, %v1059_v10 }
 0x217   : > { %v858_v60 = vpop.permute.xlu1 %857  ;;  %v833_v55 = vmul.f32 %v3079_v34, %v809_v21  ;;  %v834_v25 = vmul.f32 %v3079_v34, %v810_v36  ;;  %v3085_v34 = vld [vmem:[#allocation25_spill] sm:$0xff] }
 0x218   : > { %v863_v57 = vsel %vm859_vm4, %v850_v26, %v858_v60  ;;  %v867_v31 = vsel %vm859_vm4, %v858_v60, %v850_v26  ;;  %v941_v26 = vmul.f32 %v2465_v63, %v2338_v53  ;;  %v3083_v60 = vld [vmem:[#allocation18_spill] sm:$0xff] }
 0x219   : > { %v887_v23 = vmul.f32 %v2477_v24, %v867_v31  ;;  %v888_v38 = vmul.f32 %v2480_v43, %v863_v57  ;;  %v841_v2 = vadd.f32 %v833_v55, %v763_v28  ;;  %v842_v59 = vadd.f32 %v834_v25, %v764_v42  ;;  %v1145_v57 = vpop.permute.xlu0 %1144  ;;  %v3086_v42 = vld [vmem:[#allocation27_spill] sm:$0xff] }
 0x21a   : > { %v965_v15 = vmul.f32 %v3082_v16, %v941_v26  ;;  %v1150_v31 = vsel %vm1146_vm8, %v1137_v45, %v1145_v57  ;;  %v1154_v9 = vsel %vm1146_vm8, %v1145_v57, %v1137_v45 }
 0x21b   : > { %v989_v49 = vpop.permute.xlu1 %988  ;;  %v911_v54 = vmul.f32 %v3080_v33, %v887_v23  ;;  %v912_v41 = vmul.f32 %v3080_v33, %v888_v38  ;;  %v1174_v36 = vmul.f32 %v2582_v27, %v1150_v31 }
 0x21c   : > { %v994_v24 = vsel %vm990_vm5, %v981_v18, %v989_v49  ;;  %v998_v43 = vsel %vm990_vm5, %v989_v49, %v981_v18  ;;  %v1072_v18 = vsel %vm1068_vm7, %v1059_v10, %v1067_v11 }
 0x21d   : > { %v919_v62 = vadd.f32 %v911_v54, %v841_v2  ;;  %v920_v37 = vadd.f32 %v912_v41, %v842_v59  ;;  %v1018_v47 = vmul.f32 %v2509_v29, %v994_v24  ;;  %v1019_v7 = vmul.f32 %v2512_v1, %v998_v43  ;;  %v1308_v43 = vpop.permute.xlu0 %1307 }
 0x21e   : > { %v1096_v29 = vmul.f32 %v2539_v13, %v1072_v18  ;;  %v1097_v1 = vmul.f32 %v2542_v0, %v1076_v48  ;;  %v1175_v0 = vmul.f32 %v2585_v14, %v1154_v9  ;;  %v1198_v55 = vmul.f32 %v3085_v34, %v1174_v36 }
 0x21f   : > { %v972_v53 = vadd.f32 %v964_v52, %v919_v62  ;;  %v973_v63 = vadd.f32 %v965_v15, %v920_v37  ;;  %v1042_v50 = vmul.f32 %v3083_v60, %v1018_v47  ;;  %v1043_v20 = vmul.f32 %v3083_v60, %v1019_v7 }
 0x220   : > { %v1120_v23 = vmul.f32 %v3084_v56, %v1096_v29  ;;  %v1121_v13 = vmul.f32 %v3084_v56, %v1097_v1  ;;  %v1391_v1 = vld [vmem:[%s3004_s6 + $0x8] sm:$0xff]  ;;  %v1393_v56 = vld [vmem:[%s3004_s6 + $0x18] sm:$0xff] }
 0x221   : > { %v1050_v58 = vadd.f32 %v1042_v50, %v972_v53  ;;  %v1051_v21 = vadd.f32 %v1043_v20, %v973_v63 }
 0x223   : > { %v1128_v4 = vadd.f32 %v1120_v23, %v1050_v58  ;;  %v1129_v30 = vadd.f32 %v1121_v13, %v1051_v21  ;;  %v1390_v58 = vld [vmem:[%s3004_s6] sm:$0xff]  ;;  %v1392_v21 = vld [vmem:[%s3004_s6 + $0x10] sm:$0xff] }
 0x225   : > { %v1206_v49 = vadd.f32 %v1198_v55, %v1128_v4 }
 0x22c   : > { %v1303_v10 = vpop.permute.xlu1 %1302 }
 0x22d   : > { %v1314_v17 = vadd.f32 %v1303_v10, %v2799_v51  ;;  %v1315_v22 = vadd.f32 %v1303_v10, %v2801_v61  ;;  %v1199_v61 = vmul.f32 %v3085_v34, %v1175_v0 }
 0x22f   : > { %v1696_v38 = vmul.f32 -1.442695, %v1314_v17  ;;  %v1697_v35 = vmul.f32 -1.442695, %v1315_v22  ;;  %v1207_v28 = vadd.f32 %v1199_v61, %v1129_v30 }
 0x230   : > { %v1223_v45 = vpop.permute.xlu1 %1222 }
 0x231   : > { %1847 = vpow2.f32 %v1696_v38  ;;  %v1228_v27 = vsel %vm1224_vm6, %v1215_v5, %v1223_v45  ;;  %v1232_v51 = vsel %vm1224_vm6, %v1223_v45, %v1215_v5 }
 0x232   : > { %1849 = vpow2.f32 %v1697_v35  ;;  %v1252_v25 = vmul.f32 %v2549_v3, %v1228_v27  ;;  %v1253_v14 = vmul.f32 %v2552_v19, %v1232_v51 }
 0x234   : > { %v1276_v33 = vmul.f32 %v3086_v42, %v1252_v25  ;;  %v1277_v54 = vmul.f32 %v3086_v42, %v1253_v14  ;;  %v1412_v14 = vld [vmem:[%s3005_s7] sm:$0x1] }
 0x236   : > { %v1284_v41 = vadd.f32 %v1276_v33, %v1206_v49  ;;  %v1285_v24 = vadd.f32 %v1277_v54, %v1207_v28 }
 0x238   : > { %v1316_v40 = vadd.f32 %v1308_v43, %v1284_v41  ;;  %v1317_v46 = vadd.f32 %v1308_v43, %v1285_v24  ;;  %v1422_v43 = vld [vmem:[%s3006_s8 + $0x8] sm:$0xff] }
 0x23a   : > { %v1698_v44 = vmul.f32 -1.442695, %v1316_v40  ;;  %v1699_v5 = vmul.f32 -1.442695, %v1317_v46 }
 0x23b   : > { %v1848_v26 = vpop.eup %1847 }
 0x23c   : > { %v1850_v2 = vpop.eup %1849  ;;  %v1346_v59 = vadd.f32 1.0, %v1848_v26  ;;  %1851 = vpow2.f32 %v1698_v44  ;;  %v1424_v44 = vld [vmem:[%s3006_s8 + $0x18] sm:$0xff] }
 0x23d   : > { %v1347_v3 = vadd.f32 1.0, %v1850_v2  ;;  %1853 = vpow2.f32 %v1699_v5  ;;  %v1423_v5 = vld [vmem:[%s3006_s8 + $0x10] sm:$0xff] }
 0x23e   : > { %1855 = vrcp.f32 %v1346_v59 }
 0x23f   : > { %1857 = vrcp.f32 %v1347_v3 }
 0x246   : > { %v1852_v19 = vpop.eup %1851 }
 0x247   : > { %v1854_v11 = vpop.eup %1853  ;;  %v1348_v62 = vadd.f32 1.0, %v1852_v19 }
 0x248   : > { %v1856_v37 = vpop.eup %1855  ;;  %v1349_v47 = vadd.f32 1.0, %v1854_v11 }
 0x249   : > { %v1858_v7 = vpop.eup %1857  ;;  %v2875_v16 = vmul.f32 %v1856_v37, %v1314_v17  ;;  %1859 = vrcp.f32 %v1348_v62  ;;  %v1446_v37 = vld [vmem:[%s3007_s9 + $0x8] sm:$0xff] }
 0x24a   : > { %v2877_v52 = vmul.f32 %v1858_v7, %v1315_v22  ;;  %1861 = vrcp.f32 %v1349_v47  ;;  %v1445_v47 = vld [vmem:[%s3007_s9] sm:$0xff] }
 0x24c   : > { %v1380_v15 = vadd.f32 %v2877_v52, %v2875_v16 }
 0x24e   : > { %1381 = vadd.xlane.f32.xlu0 %v1380_v15 }
 0x253   : > { %v1860_v18 = vpop.eup %1859 }
 0x254   : > { %v1862_v48 = vpop.eup %1861  ;;  %v2881_v53 = vmul.f32 %v1860_v18, %v1316_v40  ;;  %v1421_v40 = vld [vmem:[%s3006_s8] sm:$0xff] }
 0x255   : > { %v2883_v63 = vmul.f32 %v1862_v48, %v1317_v46 }
 0x257   : > { %v1383_v60 = vadd.f32 %v2883_v63, %v2881_v53 }
 0x259   : > { %1384 = vadd.xlane.f32.xlu1 %v1383_v60  ;;  %v1448_v60 = vld [vmem:[%s3007_s9 + $0x18] sm:$0xff] }
 0x268   : > { %v1376_v20 = vpop.xlane.xlu1 %1375 }
 0x269   : > { %v1386_v31 = vmul.f32 0.00390625, %v1376_v20 }
 0x26b   : > { %v1394_v36 = vmul.f32 %v1390_v58, %v1386_v31 }
 0x26d   : > { %v1399_v13 = vsel %vm1398_vm9, %v1394_v36, 0.0 }
 0x27f   : > { %v1379_v50 = vpop.xlane.xlu0 %1378 }
 0x280   : > { %v1387_v29 = vmul.f32 0.00390625, %v1379_v50  ;;  %v1447_v50 = vld [vmem:[%s3007_s9 + $0x10] sm:$0xff] }
 0x282   : > { %v1395_v10 = vmul.f32 %v1391_v1, %v1387_v29 }
 0x284   : > { %v1400_v22 = vsel %vm1398_vm9, %v1395_v10, 0.0 }
 0x285   : > { %v1401_v35 = vadd.f32 %v1400_v22, %v1399_v13 }
 0x2db   : > { %v1382_v57 = vpop.xlane.xlu0 %1381 }
 0x2dc   : > { %v1388_v9 = vmul.f32 0.00390625, %v1382_v57 }
 0x2de   : > { %v1396_v17 = vmul.f32 %v1392_v21, %v1388_v9 }
 0x2e0   : > { %v1402_v0 = vsel %vm1398_vm9, %v1396_v17, 0.0 }
 0x2e1   : > { %v1403_v30 = vadd.f32 %v1402_v0, %v1401_v35 }
 0x2e6   : > { %v1385_v23 = vpop.xlane.xlu1 %1384 }
 0x2e7   : > { %v1389_v38 = vmul.f32 0.00390625, %v1385_v23 }
 0x2e9   : > { %v1397_v4 = vmul.f32 %v1393_v56, %v1389_v38 }
 0x2eb   : > { %v1404_v45 = vsel %vm1398_vm9, %v1397_v4, 0.0 }
 0x2ec   : > { %v1405_v34 = vadd.f32 %v1404_v45, %v1403_v30  ;;  %v1506_v45 = vld [vmem:[%s3009_s11] sm:$0xff] }
 0x2ee   : > { %v1406_v55 = vrot.slane %v1405_v34, 4 }
 0x2f0   : > { %v1407_v27 = vadd.f32 %v1406_v55, %v1405_v34 }
 0x2f2   : > { %v1408_v51 = vrot.slane %v1407_v27, 2 }
 0x2f4   : > { %v1409_v61 = vadd.f32 %v1408_v51, %v1407_v27 }
 0x2f6   : > { %v1410_v25 = vrot.slane %v1409_v61, 1 }
 0x2f8   : > { %v1411_v49 = vadd.f32 %v1410_v25, %v1409_v61 }
 0x2fa   : > { %v1413_v28 = vadd.f32 %v1412_v14, %v1411_v49 }
 0x2fc   : > { %v1700_v42 = vmul.f32 -1.442695, %v1413_v28 }
 0x2fe   : > { %1863 = vpow2.f32 %v1700_v42 }
 0x308   : > { %v1864_v33 = vpop.eup %1863 }
 0x309   : > { %v1417_v54 = vadd.f32 1.0, %v1864_v33 }
 0x30b   : > { %1865 = vrcp.f32 %v1417_v54 }
 0x315   : > { %v1866_v41 = vpop.eup %1865 }
 0x316   : > { %v1420_v24 = vmul.f32 %v1866_v41, %v1413_v28 }
 0x318   : > { %v1428_v46 = vrot.slane %v1420_v24, %v2404_v39 }
 0x31a   : > { %v1430_v26 = vmul.f32 %v1428_v46, %v1422_v43  ;;  %v1429_v2 = vmul.f32 %v1428_v46, %v1421_v40  ;;  %v1432_v19 = vmul.f32 %v1428_v46, %v1424_v44  ;;  %v1431_v11 = vmul.f32 %v1428_v46, %v1423_v5  ;;  %v1883_v43 = vld [vmem:[%s2097_s16] sm:$0xff]  ;;  %v1884_v46 = vld [vmem:[%s2097_s16 + $0x8] sm:$0xff]  ;;  %s1967_s16 = smov [#allocation2]  }
 0x31b   : > { %s1889_s23 = sshll.u32 %s1967_s16, 4  ;;  %s1890_s23 = int_to_ptr.vmem [resolvable:$false] %s1889_s23 }
 0x31c   : > { %v1436_v59 = vsel %vm1398_vm9, %v1430_v26, 0.0  ;;  %v1433_v3 = vsel %vm1398_vm9, %v1429_v2, 0.0  ;;  %v1442_v39 = vsel %vm1398_vm9, %v1432_v19, 0.0  ;;  %v1439_v62 = vsel %vm1398_vm9, %v1431_v11, 0.0  ;;  %s1891_s18 = scalar_lea.vmem %s1890_s23, 512  ;;  %p1892_p0 = scmp.lt.s32.totalorder %s2958_s30, %s1890_s23 }
 0x31d   : > { %1437 = vadd.xlane.f32.xlu1 %v1436_v59  ;;  %1434 = vadd.xlane.f32.xlu0 %v1433_v3  ;;  %p1893_p1 = scmp.lt.s32.totalorder %s1891_s18, %s1885_s26 }
 0x31f   : > { %p1894_p2 = por %p1893_p1, %p1892_p0 }
 0x321   : > { %1443 = vadd.xlane.f32.xlu1 %v1442_v39  ;;  %1440 = vadd.xlane.f32.xlu0 %v1439_v62  ;;  %p1895_p3 = pnand %p1894_p2, %p1888_p13 }
 0x3aa   : > { %v1438_v7 = vpop.xlane.xlu1 %1437  ;;  %v1435_v15 = vpop.xlane.xlu0 %1434 }
 0x3ab   : > { %v1450_v18 = vadd.f32 %v1446_v37, %v1438_v7  ;;  %v1449_v48 = vadd.f32 %v1445_v47, %v1435_v15 }
 0x3ad   : > { %v1702_v20 = vmul.f32 -1.442695, %v1450_v18  ;;  %v1701_v57 = vmul.f32 -1.442695, %v1449_v48 }
 0x3ae   : > { %v1444_v29 = vpop.xlane.xlu1 %1443  ;;  %v1441_v1 = vpop.xlane.xlu0 %1440 }
 0x3af   : > { %1867 = vpow2.f32 %v1702_v20  ;;  %v1452_v31 = vadd.f32 %v1448_v60, %v1444_v29  ;;  %v1451_v9 = vadd.f32 %v1447_v50, %v1441_v1 }
 0x3b0   : > { %1869 = vpow2.f32 %v1701_v57 }
 0x3b1   : > { %v1704_v58 = vmul.f32 -1.442695, %v1452_v31  ;;  %v1703_v21 = vmul.f32 -1.442695, %v1451_v9 }
 0x3b3   : > { %1871 = vpow2.f32 %v1704_v58 }
 0x3b4   : > { %1873 = vpow2.f32 %v1703_v21 }
 0x3b9   : > { %v1868_v10 = vpop.eup %1867 }
 0x3ba   : > { %v1870_v36 = vpop.eup %1869  ;;  %v1466_v17 = vadd.f32 1.0, %v1868_v10 }
 0x3bb   : > { %v1465_v22 = vadd.f32 1.0, %v1870_v36 }
 0x3bc   : > { %1875 = vrcp.f32 %v1466_v17 }
 0x3bd   : > { %v1872_v56 = vpop.eup %1871  ;;  %1877 = vrcp.f32 %v1465_v22 }
 0x3be   : > { %v1874_v23 = vpop.eup %1873  ;;  %v1468_v13 = vadd.f32 1.0, %v1872_v56 }
 0x3bf   : > { %v1467_v0 = vadd.f32 1.0, %v1874_v23 }
 0x3c0   : > { %1879 = vrcp.f32 %v1468_v13 }
 0x3c1   : > { %1881 = vrcp.f32 %v1467_v0 }
 0x3c6   : > { %v1876_v38 = vpop.eup %1875 }
 0x3c7   : > { %v1878_v35 = vpop.eup %1877  ;;  %1484 = vperm.xlu1 %1798, %v1876_v38  }
 0x3c8   : > { %1479 = vperm.xlu0 %1797, %v1878_v35  }
 0x3ca   : > { %v1880_v4 = vpop.eup %1879 }
 0x3cb   : > { %v1882_v30 = vpop.eup %1881 }
 0x3cc   : > { %1494 = vperm.xlu0 %1797, %v1880_v4   ;;  %1489 = vperm.xlu1 %1798, %v1882_v30  }
 0x3d0   : > { %1509 = vperm.xlu1 %1798, %v1506_v45  }
 0x446   : > { %v1485_v34 = vpop.permute.xlu1 %1484 }
 0x447   : > { %v1499_v55 = vmul.f32 %v1485_v34, %v2773_v8  ;;  %v1500_v27 = vmul.f32 %v1485_v34, %v2776_v6  ;;  %v1480_v51 = vpop.permute.xlu0 %1479 }
 0x448   : > { %v1497_v61 = vmul.f32 %v1480_v51, %v2710_v32  ;;  %v1498_v25 = vmul.f32 %v1480_v51, %v2713_v12  ;;  %v1505_v12 = vld [vmem:[%s3008_s10] sm:$0xff] }
 0x44a   : > { %v1713_v14 = vpack.c.bf16 %v1500_v27, %v1498_v25  ;;  %v1715_v49 = vpack.c.bf16 %v1499_v55, %v1497_v61 }
 0x44b   : > { %v1490_v28 = vpop.permute.xlu1 %1489  ;;  %v1495_v42 = vpop.permute.xlu0 %1494 }
 0x44c   : > { %v1501_v33 = vmul.f32 %v1490_v28, %v2875_v16  ;;  %v1502_v54 = vmul.f32 %v1490_v28, %v2877_v52  ;;  %v1503_v41 = vmul.f32 %v1495_v42, %v2881_v53  ;;  %v1504_v8 = vmul.f32 %v1495_v42, %v2883_v63  ;;  %1714 = vmatprep.subr.bf16.mxu1 %v1713_v14 }
 0x44d   : > { %1716 = vmatpush1.bf16.msra.mxu1 %v1715_v49 }
 0x44e   : > { %v1717_v6 = vpack.c.bf16 %v1504_v8, %v1502_v54  ;;  %v1719_v32 = vpack.c.bf16 %v1503_v41, %v1501_v33 }
 0x44f   : > { %v1510_v16 = vpop.permute.xlu1 %1509 }
 0x450   : > { %1718 = vmatprep.subr.bf16.mxu1 %v1717_v6 }
 0x451   : > { %1720 = vmatpush1.bf16.msra.mxu1 %v1719_v32 }
 0x454   : > { %1705 = vmatmul.mubr.msk.f32.vlgmr.msra.gmra.mrb[0].mxu1 %vm1512_vm10, %v1505_v12 }
 0x527   : > { %v1582_v52 = vpop.f32.mrb[0].mxu1 }
 0x528   : > { %v1583_v53 = vadd.f32 %v1582_v52, %v1510_v16  ;;  %v1584_v63 = vpop.f32.mrb[1].mxu1 }
 0x529   : > { %v1585_v24 = vadd.f32 %v1584_v63, %v1510_v16 }
 0x52a   : > { %v1587_v40 = vadd.f32 %v1883_v43, %v1583_v53 }
 0x52b   : > { %v1588_v44 = vadd.f32 %v1884_v46, %v1585_v24 }
 0x52c   : > { %1589 = vst [vmem:[%s406_s15] sm:$0xff] %v1587_v40 }
 0x52d   : > { %1590 = vst [vmem:[%s406_s15 + $0x8] sm:$0xff] %v1588_v44 }
 0x52e   : > { %1898 = shalt.err (!%p1895_p3)
}
 0x52f   : > { %s1899_s28 = scalar_lea.hbm %s2956_s20, 256  ;;  %s1903_s17 = scalar_lea.hbm %s3010_s12, 512 }
 0x530   : > { %p1900_p4 = scmp.ne.s32.totalorder %s2956_s20, %s1899_s28  ;;  %p1904_p9 = scmp.lt.u32.totalorder %s2956_s20, %s3010_s12 }
 0x531   : > { %p1905_p10 = scmp.lt.u32.totalorder %s1903_s17, %s1899_s28  ;;  %p1907_p12 = scmp.lt.u32.totalorder %s1899_s28, %s2956_s20 }
 0x532   : > { %p1901_p7 = pnand %p1900_p4, %p2071_p5 }
 0x533   : > { %p1906_p11 = por %p1905_p10, %p1904_p9 }
 0x534   : > { %p1902_p8 = pneg %p1901_p7 }
 0x535   : > { %p1908_p13 = por %p1907_p12, %p1906_p11 }
 0x537   : > { %p1909_p0 = pnand %p1908_p13, %p1902_p8 }
 0x539   : > { %1912 = shalt.err (!%p1909_p0)
}
 0x53a   : > { %1721 = dma.vmem_to_hbm [thread:$0]  (%p2071_p5), %s2958_s30, 256, %s2956_s20, %s1592_s25  }
 0x53b PF: > { %p1727_p1 = scmp.ge.s32.totalorder %s1947_s24, 2  ;;  %s1618_s26 = sand.u32 1, %s1935_s21  }
 0x53c   : > { %s1619_s23 = scalar_lea.sflag [#allocation3], %s1618_s26 }
 0x53d   : > { %p1724_p2 = pnand %p1727_p1, %p2075_p6 }
 0x53f   : > { %1930 = dma.done.wait (!%p1724_p2), %s1619_s23, 256  }
 0x540   : > { %1932 = vsyncadd (!%p1724_p2), %s1619_s23, 4294967040  ;;  %s3087_s18 = sld [smem:[#allocation5_spill]]  ;;  %s3088_s23 = sld [smem:[#allocation6_spill]] }
 0x541   : > { %p22_p3 = scmp.ge.s32.totalorder %s2058_s27, 4   ;;  %s3089_s21 = smov %s1939_s22 }
 0x542   : > { %s3091_s24 = smov %s2058_s27 }
 0x543   :  { %24 = sbr.rel (!%p22_p3) target bundleno = 3 (0x3), region = 111 }
 0x546   : > { %s3090_s22 = smov %s3087_s18 }
 0x54a   :  { %1624 = vsyncpa [#allocation3], 1 }
 0x54b   :  { %1626 = vsyncpa [#allocation3 + $0x1], 1 }

</bundles_post_ra>
